<compile_context>
chip_gen: v7x
topology: tpu7x:2x2x1
jax: 0.10.0
libtpu: 0.0.40
codegen_flags: <defaults>
</compile_context>

<pallas_src>
import functools

import jax
import jax.numpy as jnp
from jax.experimental import pallas as pl
from jax.experimental.pallas import tpu as pltpu


def _leaky_relu(x, slope=0.2):
    return jnp.where(x > 0, x, slope * x)


def _round_up(n, m):
    return ((n + m - 1) // m) * m


def mlp_kernel(x_ref,
               w1_ref, b1_ref,
               w2_ref, b2_ref,
               w3_ref, b3_ref,
               w4_ref, b4_ref,
               o_ref):
    # TODO(synk): nn.Dropout(p=dropout) is identity for the module default p=0;
    # stochastic dropout is not implemented here.
    h = jnp.dot(x_ref[...], w1_ref[...],
                preferred_element_type=jnp.float32) + b1_ref[...]
    h = _leaky_relu(h).astype(jnp.bfloat16)
    h = jnp.dot(h, w2_ref[...],
                preferred_element_type=jnp.float32) + b2_ref[...]
    h = _leaky_relu(h).astype(jnp.bfloat16)
    h = jnp.dot(h, w3_ref[...],
                preferred_element_type=jnp.float32) + b3_ref[...]
    h = _leaky_relu(h).astype(jnp.bfloat16)
    out = jnp.dot(h, w4_ref[...],
                  preferred_element_type=jnp.float32) + b4_ref[...]
    o_ref[...] = out.astype(o_ref.dtype)


@functools.partial(jax.jit, static_argnames=("bm",))
def mlp_forward(x, params, *, bm=128):
    B, indim = x.shape
    outdim = params["w4"].shape[1]

    # Padded (lane/sublane friendly) sizes.
    K = _round_up(indim, 128)        # lane-dense x loads
    N_out = _round_up(outdim, 128)   # lane-dense output stores
    B_pad = _round_up(B, bm)         # whole number of batch tiles

    # bf16 operands for the MXU; biases stay f32 for the f32 accumulate path.
    xb = jnp.pad(x.astype(jnp.bfloat16),
                 ((0, B_pad - B), (0, K - indim)))
    w1 = jnp.pad(params["w1"].astype(jnp.bfloat16), ((0, K - indim), (0, 0)))
    b1 = params["b1"].astype(jnp.float32)
    w2 = params["w2"].astype(jnp.bfloat16)
    b2 = params["b2"].astype(jnp.float32)
    w3 = params["w3"].astype(jnp.bfloat16)
    b3 = params["b3"].astype(jnp.float32)
    w4 = jnp.pad(params["w4"].astype(jnp.bfloat16),
                 ((0, 0), (0, N_out - outdim)))
    b4 = jnp.pad(params["b4"].astype(jnp.float32),
                 ((0, 0), (0, N_out - outdim)))

    def full_spec(shape):
        # whole-array block, same block for every grid step
        return pl.BlockSpec(shape, lambda i: (0,) * len(shape))

    in_specs = [
        pl.BlockSpec((bm, K), lambda i: (i, 0)),        # x tile
        full_spec(w1.shape), full_spec(b1.shape),
        full_spec(w2.shape), full_spec(b2.shape),
        full_spec(w3.shape), full_spec(b3.shape),
        full_spec(w4.shape), full_spec(b4.shape),
    ]
    out_spec = pl.BlockSpec((bm, N_out), lambda i: (i, 0))

    out_padded = pl.pallas_call(
        mlp_kernel,
        out_shape=jax.ShapeDtypeStruct((B_pad, N_out), jnp.float32),
        grid_spec=pltpu.PrefetchScalarGridSpec(
            num_scalar_prefetch=0,
            grid=(pl.cdiv(B_pad, bm),),
            in_specs=in_specs,
            out_specs=out_spec,
        ),
        compiler_params=pltpu.CompilerParams(
            dimension_semantics=("parallel",),
            vmem_limit_bytes=48 * 1024 * 1024,
        ),
    )(xb, w1, b1, w2, b2, w3, b3, w4, b4)

    return out_padded[:B, :outdim]


def init_params(key, indim, outdim, dtype=jnp.float32):
    dims = [indim, 512, 256, 128, outdim]
    params = {}
    keys = jax.random.split(key, len(dims) - 1)
    for i, (din, dout) in enumerate(zip(dims[:-1], dims[1:]), start=1):
        kw, kb = jax.random.split(keys[i - 1])
        bound = 1.0 / jnp.sqrt(din)
        # deterministic uniform init (matches nn.Linear's default range)
        params[f"w{i}"] = jax.random.uniform(
            kw, (din, dout), dtype, minval=-bound, maxval=bound)
        params[f"b{i}"] = jax.random.uniform(
            kb, (1, dout), dtype, minval=-bound, maxval=bound)
    return params


def mlp_reference(x, params):
    # Mirrors the kernel numerics: bf16 operands, f32 accumulation.
    def lin(h, w, b):
        return jnp.dot(h.astype(jnp.bfloat16), w.astype(jnp.bfloat16),
                       preferred_element_type=jnp.float32) + b.astype(jnp.float32)

    h = _leaky_relu(lin(x, params["w1"], params["b1"]))
    h = _leaky_relu(lin(h, params["w2"], params["b2"]))
    h = _leaky_relu(lin(h, params["w3"], params["b3"]))
    return lin(h, params["w4"], params["b4"])


if __name__ == "__main__":
    key = jax.random.PRNGKey(0)
    k_x, k_p = jax.random.split(key)

    B, indim, outdim = 8, 32, 16
    x = jax.random.normal(k_x, (B, indim), jnp.float32)
    params = init_params(k_p, indim, outdim)

    out = mlp_forward(x, params)          # bm=128 default; batch padded inside
    out = jax.block_until_ready(out)

    ref = mlp_reference(x, params)
    assert out.shape == (B, outdim)
    assert jnp.allclose(out, ref, atol=2e-2, rtol=2e-2), (
        float(jnp.max(jnp.abs(out - ref))))

    print("KERNEL_OK")
</pallas_src>

<mosaic_0001>
module attributes {stable_mosaic.version = 11 : i64} {
  func.func @mlp_kernel(%arg0: i32, %arg1: memref<128x128xbf16, #tpu.memory_space<vmem>>, %arg2: memref<128x512xbf16, #tpu.memory_space<vmem>>, %arg3: memref<1x512xf32, #tpu.memory_space<vmem>>, %arg4: memref<512x256xbf16, #tpu.memory_space<vmem>>, %arg5: memref<1x256xf32, #tpu.memory_space<vmem>>, %arg6: memref<256x128xbf16, #tpu.memory_space<vmem>>, %arg7: memref<1x128xf32, #tpu.memory_space<vmem>>, %arg8: memref<128x128xbf16, #tpu.memory_space<vmem>>, %arg9: memref<1x128xf32, #tpu.memory_space<vmem>>, %arg10: memref<128x128xf32, #tpu.memory_space<vmem>>) attributes {dimension_semantics = [#tpu.dimension_semantics<parallel>], iteration_bounds = array<i64: 1>, scalar_prefetch = 0 : i64, scratch_operands = 0 : i64, tpu.core_type = #tpu.core_type<tc>, window_params = [{transform_indices = @transform_0, window_bounds = array<i64: 128, 128>}, {pipeline_mode = #tpu.pipeline_mode<synchronous>, transform_indices = @transform_1, window_bounds = array<i64: 128, 512>}, {pipeline_mode = #tpu.pipeline_mode<synchronous>, transform_indices = @transform_2, window_bounds = array<i64: 1, 512>}, {pipeline_mode = #tpu.pipeline_mode<synchronous>, transform_indices = @transform_3, window_bounds = array<i64: 512, 256>}, {pipeline_mode = #tpu.pipeline_mode<synchronous>, transform_indices = @transform_4, window_bounds = array<i64: 1, 256>}, {pipeline_mode = #tpu.pipeline_mode<synchronous>, transform_indices = @transform_5, window_bounds = array<i64: 256, 128>}, {pipeline_mode = #tpu.pipeline_mode<synchronous>, transform_indices = @transform_6, window_bounds = array<i64: 1, 128>}, {pipeline_mode = #tpu.pipeline_mode<synchronous>, transform_indices = @transform_7, window_bounds = array<i64: 128, 128>}, {pipeline_mode = #tpu.pipeline_mode<synchronous>, transform_indices = @transform_8, window_bounds = array<i64: 1, 128>}, {transform_indices = @transform_9, window_bounds = array<i64: 128, 128>}]} {
    %c0 = arith.constant 0 : index
    %c0_0 = arith.constant 0 : index
    %0 = vector.load %arg1[%c0, %c0_0] : memref<128x128xbf16, #tpu.memory_space<vmem>>, vector<128x128xbf16>
    %c0_1 = arith.constant 0 : index
    %c0_2 = arith.constant 0 : index
    %1 = vector.load %arg2[%c0_1, %c0_2] : memref<128x512xbf16, #tpu.memory_space<vmem>>, vector<128x512xbf16>
    %cst = arith.constant dense<0.000000e+00> : vector<128x512xf32>
    %2 = tpu.matmul %0, %1, %cst {dimension_numbers = #tpu.dot_dimension_numbers<[1], [0], [0], [1], [0, 0, 1, 1], [], []>} : vector<128x128xbf16>, vector<128x512xbf16>, vector<128x512xf32> -> vector<128x512xf32>
    %c0_3 = arith.constant 0 : index
    %c0_4 = arith.constant 0 : index
    %3 = vector.load %arg3[%c0_3, %c0_4] : memref<1x512xf32, #tpu.memory_space<vmem>>, vector<1x512xf32>
    %4 = vector.broadcast %3 : vector<1x512xf32> to vector<128x512xf32>
    %5 = arith.addf %2, %4 : vector<128x512xf32>
    %cst_5 = arith.constant 0.000000e+00 : f32
    %6 = vector.broadcast %cst_5 : f32 to vector<128x512xf32>
    %7 = arith.cmpf ogt, %5, %6 : vector<128x512xf32>
    %cst_6 = arith.constant 2.000000e-01 : f32
    %8 = vector.broadcast %cst_6 : f32 to vector<128x512xf32>
    %9 = arith.mulf %8, %5 : vector<128x512xf32>
    %10 = arith.select %7, %5, %9 : vector<128x512xi1>, vector<128x512xf32>
    %11 = arith.truncf %10 : vector<128x512xf32> to vector<128x512xbf16>
    %c0_7 = arith.constant 0 : index
    %c0_8 = arith.constant 0 : index
    %12 = vector.load %arg4[%c0_7, %c0_8] : memref<512x256xbf16, #tpu.memory_space<vmem>>, vector<512x256xbf16>
    %cst_9 = arith.constant dense<0.000000e+00> : vector<128x256xf32>
    %13 = tpu.matmul %11, %12, %cst_9 {dimension_numbers = #tpu.dot_dimension_numbers<[1], [0], [0], [1], [0, 0, 1, 1], [], []>} : vector<128x512xbf16>, vector<512x256xbf16>, vector<128x256xf32> -> vector<128x256xf32>
    %c0_10 = arith.constant 0 : index
    %c0_11 = arith.constant 0 : index
    %14 = vector.load %arg5[%c0_10, %c0_11] : memref<1x256xf32, #tpu.memory_space<vmem>>, vector<1x256xf32>
    %15 = vector.broadcast %14 : vector<1x256xf32> to vector<128x256xf32>
    %16 = arith.addf %13, %15 : vector<128x256xf32>
    %cst_12 = arith.constant 0.000000e+00 : f32
    %17 = vector.broadcast %cst_12 : f32 to vector<128x256xf32>
    %18 = arith.cmpf ogt, %16, %17 : vector<128x256xf32>
    %cst_13 = arith.constant 2.000000e-01 : f32
    %19 = vector.broadcast %cst_13 : f32 to vector<128x256xf32>
    %20 = arith.mulf %19, %16 : vector<128x256xf32>
    %21 = arith.select %18, %16, %20 : vector<128x256xi1>, vector<128x256xf32>
    %22 = arith.truncf %21 : vector<128x256xf32> to vector<128x256xbf16>
    %c0_14 = arith.constant 0 : index
    %c0_15 = arith.constant 0 : index
    %23 = vector.load %arg6[%c0_14, %c0_15] : memref<256x128xbf16, #tpu.memory_space<vmem>>, vector<256x128xbf16>
    %cst_16 = arith.constant dense<0.000000e+00> : vector<128x128xf32>
    %24 = tpu.matmul %22, %23, %cst_16 {dimension_numbers = #tpu.dot_dimension_numbers<[1], [0], [0], [1], [0, 0, 1, 1], [], []>} : vector<128x256xbf16>, vector<256x128xbf16>, vector<128x128xf32> -> vector<128x128xf32>
    %c0_17 = arith.constant 0 : index
    %c0_18 = arith.constant 0 : index
    %25 = vector.load %arg7[%c0_17, %c0_18] : memref<1x128xf32, #tpu.memory_space<vmem>>, vector<1x128xf32>
    %26 = vector.broadcast %25 : vector<1x128xf32> to vector<128x128xf32>
    %27 = arith.addf %24, %26 : vector<128x128xf32>
    %cst_19 = arith.constant 0.000000e+00 : f32
    %28 = vector.broadcast %cst_19 : f32 to vector<128x128xf32>
    %29 = arith.cmpf ogt, %27, %28 : vector<128x128xf32>
    %cst_20 = arith.constant 2.000000e-01 : f32
    %30 = vector.broadcast %cst_20 : f32 to vector<128x128xf32>
    %31 = arith.mulf %30, %27 : vector<128x128xf32>
    %32 = arith.select %29, %27, %31 : vector<128x128xi1>, vector<128x128xf32>
    %33 = arith.truncf %32 : vector<128x128xf32> to vector<128x128xbf16>
    %c0_21 = arith.constant 0 : index
    %c0_22 = arith.constant 0 : index
    %34 = vector.load %arg8[%c0_21, %c0_22] : memref<128x128xbf16, #tpu.memory_space<vmem>>, vector<128x128xbf16>
    %cst_23 = arith.constant dense<0.000000e+00> : vector<128x128xf32>
    %35 = tpu.matmul %33, %34, %cst_23 {dimension_numbers = #tpu.dot_dimension_numbers<[1], [0], [0], [1], [0, 0, 1, 1], [], []>} : vector<128x128xbf16>, vector<128x128xbf16>, vector<128x128xf32> -> vector<128x128xf32>
    %c0_24 = arith.constant 0 : index
    %c0_25 = arith.constant 0 : index
    %36 = vector.load %arg9[%c0_24, %c0_25] : memref<1x128xf32, #tpu.memory_space<vmem>>, vector<1x128xf32>
    %37 = vector.broadcast %36 : vector<1x128xf32> to vector<128x128xf32>
    %38 = arith.addf %35, %37 : vector<128x128xf32>
    %c0_26 = arith.constant 0 : index
    %c0_27 = arith.constant 0 : index
    %39 = vector.load %arg10[%c0_26, %c0_27] : memref<128x128xf32, #tpu.memory_space<vmem>>, vector<128x128xf32>
    tpu.vector_store %arg10[%c0_26, %c0_27], %38 {strides = array<i32>} : memref<128x128xf32, #tpu.memory_space<vmem>>, vector<128x128xf32>,
    return
  }
  func.func @transform_0(%arg0: i32) -> (i32, i32) {
    %c0_i32 = arith.constant 0 : i32
    %c0_i32_0 = arith.constant 0 : i32
    return %arg0, %c0_i32 : i32, i32
  }
  func.func @transform_1(%arg0: i32) -> (i32, i32) {
    %c0_i32 = arith.constant 0 : i32
    %c0_i32_0 = arith.constant 0 : i32
    %c0_i32_1 = arith.constant 0 : i32
    return %c0_i32, %c0_i32_0 : i32, i32
  }
  func.func @transform_2(%arg0: i32) -> (i32, i32) {
    %c0_i32 = arith.constant 0 : i32
    %c0_i32_0 = arith.constant 0 : i32
    %c0_i32_1 = arith.constant 0 : i32
    return %c0_i32, %c0_i32_0 : i32, i32
  }
  func.func @transform_3(%arg0: i32) -> (i32, i32) {
    %c0_i32 = arith.constant 0 : i32
    %c0_i32_0 = arith.constant 0 : i32
    %c0_i32_1 = arith.constant 0 : i32
    return %c0_i32, %c0_i32_0 : i32, i32
  }
  func.func @transform_4(%arg0: i32) -> (i32, i32) {
    %c0_i32 = arith.constant 0 : i32
    %c0_i32_0 = arith.constant 0 : i32
    %c0_i32_1 = arith.constant 0 : i32
    return %c0_i32, %c0_i32_0 : i32, i32
  }
  func.func @transform_5(%arg0: i32) -> (i32, i32) {
    %c0_i32 = arith.constant 0 : i32
    %c0_i32_0 = arith.constant 0 : i32
    %c0_i32_1 = arith.constant 0 : i32
    return %c0_i32, %c0_i32_0 : i32, i32
  }
  func.func @transform_6(%arg0: i32) -> (i32, i32) {
    %c0_i32 = arith.constant 0 : i32
    %c0_i32_0 = arith.constant 0 : i32
    %c0_i32_1 = arith.constant 0 : i32
    return %c0_i32, %c0_i32_0 : i32, i32
  }
  func.func @transform_7(%arg0: i32) -> (i32, i32) {
    %c0_i32 = arith.constant 0 : i32
    %c0_i32_0 = arith.constant 0 : i32
    %c0_i32_1 = arith.constant 0 : i32
    return %c0_i32, %c0_i32_0 : i32, i32
  }
  func.func @transform_8(%arg0: i32) -> (i32, i32) {
    %c0_i32 = arith.constant 0 : i32
    %c0_i32_0 = arith.constant 0 : i32
    %c0_i32_1 = arith.constant 0 : i32
    return %c0_i32, %c0_i32_0 : i32, i32
  }
  func.func @transform_9(%arg0: i32) -> (i32, i32) {
    %c0_i32 = arith.constant 0 : i32
    %c0_i32_0 = arith.constant 0 : i32
    return %arg0, %c0_i32 : i32, i32
  }
}

</mosaic_0001>

<bundles_post_ra>
// kernel: mlp_forward.1
= control target key start
LH: loop header
LB: loop body
LE: loop exit
PB: predicated region body
PF: predicated region fallthrough
CT: control target
= control target key end

     0   :  { %v2454_v1 = vmov 0   ;;  %s3338_s1 = inlined_call_operand.vmem [shape: bf16[128,512], index: 1, kind: input, shape index: {}]   ;;  %s3339_s0 = inlined_call_operand.vmem [shape: bf16[128,128], index: 0, kind: input, shape index: {}]   ;;  %s3340_s3 = inlined_call_operand.vmem [shape: bf16[512,256], index: 3, kind: input, shape index: {}]   ;;  %s3341_s2 = inlined_call_operand.vmem [shape: f32[1,512], index: 2, kind: input, shape index: {}]   ;;  %s3342_s5 = inlined_call_operand.vmem [shape: bf16[256,128], index: 5, kind: input, shape index: {}]   ;;  %s3343_s7 = inlined_call_operand.vmem [shape: bf16[128,128], index: 7, kind: input, shape index: {}]   ;;  %s3344_s4 = inlined_call_operand.vmem [shape: f32[1,256], index: 4, kind: input, shape index: {}]   ;;  %s3345_s6 = inlined_call_operand.vmem [shape: f32[1,128], index: 6, kind: input, shape index: {}]   ;;  %s3346_s8 = inlined_call_operand.vmem [shape: f32[1,128], index: 8, kind: input, shape index: {}]   ;;  %s3347_s9 = inlined_call_operand.vmem [shape: f32[128,128], index: 9, kind: output, shape index: {}]  }
   0x1   :  { %v2278_v0 = vld [vmem:[%s3338_s1 + $0x4] ss:$16 sps:$4 sm:$0xff]   ;;  %343 = vmatprep.mubr.bf16.mxu0 %v2454_v1  ;;  %456 = vmatprep.mubr.bf16.mxu1 %v2454_v1  ;;  %v2280_v2 = vld [vmem:[%s3338_s1] ss:$16 sps:$4 sm:$0xff]   ;;  %v2306_v12 = vld [vmem:[%s3338_s1 + $0xc] ss:$16 sps:$4 sm:$0xff]  }
   0x2   :  { %311 = vmatprep.subr.bf16.mxu0 %v2278_v0  ;;  %v2281_v3 = vld [vmem:[%s3338_s1 + $0x24] ss:$16 sps:$4 sm:$0xff]   ;;  %v2283_v4 = vld [vmem:[%s3338_s1 + $0x20] ss:$16 sps:$4 sm:$0xff]   ;;  %v2308_v13 = vld [vmem:[%s3338_s1 + $0x8] ss:$16 sps:$4 sm:$0xff]   ;;  %424 = vmatprep.subr.bf16.mxu1 %v2306_v12 }
   0x3   :  { %312 = vmatpush1.bf16.msra.mxu0 %v2280_v2  ;;  %v2284_v5 = vld [vmem:[%s3338_s1 + $0x44] ss:$16 sps:$4 sm:$0xff]   ;;  %v2286_v6 = vld [vmem:[%s3338_s1 + $0x40] ss:$16 sps:$4 sm:$0xff]   ;;  %v2309_v14 = vld [vmem:[%s3338_s1 + $0x2c] ss:$16 sps:$4 sm:$0xff]   ;;  %425 = vmatpush1.bf16.msra.mxu1 %v2308_v13 }
   0x4   :  { %313 = vmatprep.subr.bf16.mxu0 %v2281_v3  ;;  %v2287_v7 = vld [vmem:[%s3338_s1 + $0x64] ss:$16 sps:$4 sm:$0xff]   ;;  %v2289_v8 = vld [vmem:[%s3338_s1 + $0x60] ss:$16 sps:$4 sm:$0xff]   ;;  %v2312_v15 = vld [vmem:[%s3338_s1 + $0x28] ss:$16 sps:$4 sm:$0xff]   ;;  %426 = vmatprep.subr.bf16.mxu1 %v2309_v14 }
   0x5   :  { %v2290_v9 = vld [vmem:[%s3338_s1 + $0x84] ss:$16 sps:$4 sm:$0xff]   ;;  %v2292_v10 = vld [vmem:[%s3338_s1 + $0x80] ss:$16 sps:$4 sm:$0xff]   ;;  %v2313_v17 = vld [vmem:[%s3338_s1 + $0x4c] ss:$16 sps:$4 sm:$0xff]  }
   0x6   :  { %v2293_v11 = vld [vmem:[%s3338_s1 + $0xa4] ss:$16 sps:$4 sm:$0xff]   ;;  %v2295_v16 = vld [vmem:[%s3338_s1 + $0xa0] ss:$16 sps:$4 sm:$0xff]   ;;  %v2315_v20 = vld [vmem:[%s3338_s1 + $0x48] ss:$16 sps:$4 sm:$0xff]  }
   0x7   :  { %314 = vmatpush1.bf16.msra.mxu0 %v2283_v4  ;;  %v2296_v18 = vld [vmem:[%s3338_s1 + $0xc4] ss:$16 sps:$4 sm:$0xff]   ;;  %v2298_v19 = vld [vmem:[%s3338_s1 + $0xc0] ss:$16 sps:$4 sm:$0xff]   ;;  %427 = vmatpush1.bf16.msra.mxu1 %v2312_v15  ;;  %v2316_v21 = vld [vmem:[%s3338_s1 + $0x6c] ss:$16 sps:$4 sm:$0xff]  }
   0x8   :  { %315 = vmatprep.subr.bf16.mxu0 %v2284_v5  ;;  %428 = vmatprep.subr.bf16.mxu1 %v2313_v17  ;;  %v2299_v22 = vld [vmem:[%s3338_s1 + $0xe4] ss:$16 sps:$4 sm:$0xff]   ;;  %v2301_v23 = vld [vmem:[%s3338_s1 + $0xe0] ss:$16 sps:$4 sm:$0xff]   ;;  %v2319_v24 = vld [vmem:[%s3338_s1 + $0x68] ss:$16 sps:$4 sm:$0xff]  }
   0x9   :  { %v2320_v25 = vld [vmem:[%s3338_s1 + $0x8c] ss:$16 sps:$4 sm:$0xff]   ;;  %v2302_v26 = vld [vmem:[%s3339_s0] sm:$0xff]   ;;  %v2322_v27 = vld [vmem:[%s3338_s1 + $0x88] ss:$16 sps:$4 sm:$0xff]  }
   0xa   :  { %v2336_v28 = vld [vmem:[%s3340_s3 + $0x4] ss:$8 sps:$4 sm:$0xff]   ;;  %v2334_v30 = vld [vmem:[%s3340_s3] ss:$8 sps:$4 sm:$0xff]   ;;  %v2339_v31 = vld [vmem:[%s3340_s3 + $0x14] ss:$8 sps:$4 sm:$0xff]  }
   0xb   :  { %316 = vmatpush1.bf16.msra.mxu0 %v2286_v6  ;;  %429 = vmatpush1.bf16.msra.mxu1 %v2315_v20  ;;  %v2323_v29 = vld [vmem:[%s3338_s1 + $0xac] ss:$16 sps:$4 sm:$0xff]   ;;  %v2326_v32 = vld [vmem:[%s3338_s1 + $0xa8] ss:$16 sps:$4 sm:$0xff]   ;;  %v2304_v44 = vld [vmem:[%s3339_s0 + $0x10] sm:$0xff]  }
   0xc   :  { %317 = vmatprep.subr.bf16.mxu0 %v2287_v7  ;;  %430 = vmatprep.subr.bf16.mxu1 %v2316_v21  ;;  %v2327_v33 = vld [vmem:[%s3338_s1 + $0xcc] ss:$16 sps:$4 sm:$0xff]   ;;  %v2337_v34 = vld [vmem:[%s3340_s3 + $0x10] ss:$8 sps:$4 sm:$0xff]   ;;  %v2340_v39 = vld [vmem:[%s3340_s3 + $0x20] ss:$8 sps:$4 sm:$0xff]  }
   0xd   :  { %v2342_v35 = vld [vmem:[%s3340_s3 + $0x24] ss:$8 sps:$4 sm:$0xff]   ;;  %v2329_v37 = vld [vmem:[%s3338_s1 + $0xc8] ss:$16 sps:$4 sm:$0xff]   ;;  %v2345_v40 = vld [vmem:[%s3340_s3 + $0x34] ss:$8 sps:$4 sm:$0xff]  }
   0xe   :  { %v2303_v36 = vld [vmem:[%s3339_s0 + $0x8] sm:$0xff]   ;;  %v2343_v42 = vld [vmem:[%s3340_s3 + $0x30] ss:$8 sps:$4 sm:$0xff]   ;;  %v2351_v46 = vld [vmem:[%s3340_s3 + $0x54] ss:$8 sps:$4 sm:$0xff]  }
   0xf   :  { %318 = vmatpush1.bf16.msra.mxu0 %v2289_v8  ;;  %431 = vmatpush1.bf16.msra.mxu1 %v2319_v24  ;;  %v2330_v38 = vld [vmem:[%s3338_s1 + $0xec] ss:$16 sps:$4 sm:$0xff]   ;;  %v2333_v41 = vld [vmem:[%s3338_s1 + $0xe8] ss:$16 sps:$4 sm:$0xff]   ;;  %v2311_v54 = vld [vmem:[%s3339_s0 + $0x20] sm:$0xff]  }
  0x10   :  { %319 = vmatprep.subr.bf16.mxu0 %v2290_v9  ;;  %432 = vmatprep.subr.bf16.mxu1 %v2320_v25  ;;  %v2348_v43 = vld [vmem:[%s3340_s3 + $0x44] ss:$8 sps:$4 sm:$0xff]   ;;  %v2346_v45 = vld [vmem:[%s3340_s3 + $0x40] ss:$8 sps:$4 sm:$0xff]   ;;  %v2349_v47 = vld [vmem:[%s3340_s3 + $0x50] ss:$8 sps:$4 sm:$0xff]  }
  0x11   :  { %v2354_v48 = vld [vmem:[%s3340_s3 + $0x64] ss:$8 sps:$4 sm:$0xff]   ;;  %v2305_v49 = vld [vmem:[%s3339_s0 + $0x18] sm:$0xff]   ;;  %v2352_v50 = vld [vmem:[%s3340_s3 + $0x60] ss:$8 sps:$4 sm:$0xff]  }
  0x12   :  { %v2357_v51 = vld [vmem:[%s3340_s3 + $0x74] ss:$8 sps:$4 sm:$0xff]   ;;  %v2355_v52 = vld [vmem:[%s3340_s3 + $0x70] ss:$8 sps:$4 sm:$0xff]   ;;  %v2360_v53 = vld [vmem:[%s3340_s3 + $0x84] ss:$8 sps:$4 sm:$0xff]  }
  0x13   :  { %320 = vmatpush1.bf16.msra.mxu0 %v2292_v10  ;;  %433 = vmatpush1.bf16.msra.mxu1 %v2322_v27  ;;  %v2358_v55 = vld [vmem:[%s3340_s3 + $0x80] ss:$8 sps:$4 sm:$0xff]   ;;  %v2363_v56 = vld [vmem:[%s3340_s3 + $0x94] ss:$8 sps:$4 sm:$0xff]   ;;  %v2361_v57 = vld [vmem:[%s3340_s3 + $0x90] ss:$8 sps:$4 sm:$0xff]   ;;  %v83_v10 = vlaneseq }
  0x14   :  { %321 = vmatprep.subr.bf16.mxu0 %v2293_v11  ;;  %434 = vmatprep.subr.bf16.mxu1 %v2323_v29  ;;  %v2366_v58 = vld [vmem:[%s3340_s3 + $0xa4] ss:$8 sps:$4 sm:$0xff]   ;;  %v2364_v60 = vld [vmem:[%s3340_s3 + $0xa0] ss:$8 sps:$4 sm:$0xff]   ;;  %v2369_v61 = vld [vmem:[%s3340_s3 + $0xb4] ss:$8 sps:$4 sm:$0xff]  }
  0x15   :  { %v2318_v59 = vld [vmem:[%s3339_s0 + $0x28] sm:$0xff]   ;;  %v2367_v62 = vld [vmem:[%s3340_s3 + $0xb0] ss:$8 sps:$4 sm:$0xff]   ;;  %v2375_v3 = vld [vmem:[%s3340_s3 + $0xd4] ss:$8 sps:$4 sm:$0xff]   ;;  %v2740_v11 = vshrl.u32 %v83_v10, 7 }
  0x16   :  { %v2372_v63 = vld [vmem:[%s3340_s3 + $0xc4] ss:$8 sps:$4 sm:$0xff]   ;;  %v2325_v0 = vld [vmem:[%s3339_s0 + $0x30] sm:$0xff]   ;;  %v2370_v2 = vld [vmem:[%s3340_s3 + $0xc0] ss:$8 sps:$4 sm:$0xff]  }
  0x17   :  { %322 = vmatpush1.bf16.msra.mxu0 %v2295_v16  ;;  %435 = vmatpush1.bf16.msra.mxu1 %v2326_v32  ;;  %v2373_v4 = vld [vmem:[%s3340_s3 + $0xd0] ss:$8 sps:$4 sm:$0xff]   ;;  %v2378_v6 = vld [vmem:[%s3340_s3 + $0xe4] ss:$8 sps:$4 sm:$0xff]   ;;  %v2376_v7 = vld [vmem:[%s3340_s3 + $0xe0] ss:$8 sps:$4 sm:$0xff]  }
  0x18   :  { %323 = vmatprep.subr.bf16.mxu0 %v2296_v18  ;;  %436 = vmatprep.subr.bf16.mxu1 %v2327_v33  ;;  %v2332_v5 = vld [vmem:[%s3339_s0 + $0x38] sm:$0xff]   ;;  %v85_v12 = vsub.s32 0, %v2740_v11  ;;  %v2746_v13 = vld [vmem:[%s3341_s2] sm:$0xf]  ;;  %v89_v14 = vsub.s32 1, %v2740_v11  ;;  %v93_v25 = vsub.s32 2, %v2740_v11 }
  0x19   :  { %v2381_v8 = vld [vmem:[%s3340_s3 + $0xf4] ss:$8 sps:$4 sm:$0xff]   ;;  %v2379_v9 = vld [vmem:[%s3340_s3 + $0xf0] ss:$8 sps:$4 sm:$0xff]   ;;  %v2431_v32 = vld [vmem:[%s3342_s5] sm:$0xff]  }
  0x1a   :  { %v2752_v15 = vrot.slane %v2746_v13, %v85_v12  ;;  %v2757_v16 = vrot.slane %v2746_v13, %v89_v14 }
  0x1b   :  { %324 = vmatpush1.bf16.msra.mxu0 %v2298_v19  ;;  %437 = vmatpush1.bf16.msra.mxu1 %v2329_v37 }
  0x1c   :  { %325 = vmatprep.subr.bf16.mxu0 %v2299_v22  ;;  %438 = vmatprep.subr.bf16.mxu1 %v2330_v38 }
  0x1f   :  { %326 = vmatpush1.bf16.msra.mxu0 %v2301_v23  ;;  %439 = vmatpush1.bf16.msra.mxu1 %v2333_v41  ;;  %v2432_v41 = vld [vmem:[%s3342_s5 + $0x48] sm:$0xff]  }
  0x20   :  { %1157 = vmatprep.subr.bf16.mxu0 %v2336_v28 }
  0x22   :  { %344 = vmatmul.mubr.bf16.vlgmr.msra.gmra.mrb[0].mxu0 %v2302_v26  ;;  %457 = vmatmul.mubr.bf16.vlgmr.msra.gmra.mrb[0].mxu1 %v2302_v26  ;;  %v97_v26 = vsub.s32 3, %v2740_v11 }
  0x23   :  { %353 = vmatprep.mubr.bf16.mxu0 %v2454_v1  ;;  %1158 = vmatpush1.bf16.msra.mxu0 %v2334_v30  ;;  %v2430_v30 = vld [vmem:[%s3342_s5 + $0x40] sm:$0xff]  }
  0x24   :  { %1159 = vmatprep.subr.bf16.mxu0 %v2339_v31  ;;  %466 = vmatprep.mubr.bf16.mxu1 %v2454_v1 }
  0x25   :  { %2101 = vmatprep.subr.bf16.mxu1 %v2430_v30 }
  0x26   :  { %2102 = vmatpush3.bf16.msra.mxu1 %v2431_v32  ;;  %v2439_v32 = vld [vmem:[%s3342_s5 + $0x20] sm:$0xff]  }
  0x27   :  { %1160 = vmatpush1.bf16.msra.mxu0 %v2337_v34  ;;  %2103 = vmatprep.subr.bf16.mxu1 %v2432_v41 }
  0x28   :  { %1161 = vmatprep.subr.bf16.mxu0 %v2342_v35  ;;  %v2382_v35 = vld [vmem:[%s3340_s3 + $0x100] ss:$8 sps:$4 sm:$0xff]  }
  0x2a   :  { %354 = vmatmul.mubr.bf16.gmra.mrb[4].mxu0 %v2303_v36  ;;  %467 = vmatmul.mubr.bf16.gmra.mrb[4].mxu1 %v2303_v36 }
  0x2b   :  { %363 = vmatprep.mubr.bf16.mxu0 %v2454_v1  ;;  %1162 = vmatpush1.bf16.msra.mxu0 %v2340_v39 }
  0x2c   :  { %1163 = vmatprep.subr.bf16.mxu0 %v2345_v40  ;;  %476 = vmatprep.mubr.bf16.mxu1 %v2454_v1  ;;  %v2387_v40 = vld [vmem:[%s3340_s3 + $0x114] ss:$8 sps:$4 sm:$0xff]  }
  0x2f   :  { %1164 = vmatpush1.bf16.msra.mxu0 %v2343_v42 }
  0x30   :  { %1165 = vmatprep.subr.bf16.mxu0 %v2348_v43 }
  0x32   :  { %364 = vmatmul.mubr.bf16.gmra.mrb[8].mxu0 %v2304_v44  ;;  %477 = vmatmul.mubr.bf16.gmra.mrb[8].mxu1 %v2304_v44 }
  0x33   :  { %373 = vmatprep.mubr.bf16.mxu0 %v2454_v1  ;;  %1166 = vmatpush1.bf16.msra.mxu0 %v2346_v45  ;;  %v2433_v45 = vld [vmem:[%s3342_s5 + $0x8] sm:$0xff]  }
  0x34   :  { %1167 = vmatprep.subr.bf16.mxu0 %v2351_v46  ;;  %486 = vmatprep.mubr.bf16.mxu1 %v2454_v1 }
  0x35   :  { %2104 = vmatpush3.bf16.msra.mxu1 %v2433_v45  ;;  %v2442_v45 = vld [vmem:[%s3342_s5 + $0x70] sm:$0xff]  }
  0x37   :  { %1168 = vmatpush1.bf16.msra.mxu0 %v2349_v47 }
  0x38   :  { %1169 = vmatprep.subr.bf16.mxu0 %v2354_v48  ;;  %v2434_v48 = vld [vmem:[%s3342_s5 + $0x50] sm:$0xff]  }
  0x39   :  { %2105 = vmatprep.subr.bf16.mxu1 %v2434_v48 }
  0x3a   :  { %374 = vmatmul.mubr.bf16.gmra.mrb[12].mxu0 %v2305_v49  ;;  %487 = vmatmul.mubr.bf16.gmra.mrb[12].mxu1 %v2305_v49 }
  0x3b   :  { %383 = vmatprep.mubr.bf16.mxu0 %v2454_v1  ;;  %1170 = vmatpush1.bf16.msra.mxu0 %v2352_v50 }
  0x3c   :  { %1171 = vmatprep.subr.bf16.mxu0 %v2357_v51  ;;  %496 = vmatprep.mubr.bf16.mxu1 %v2454_v1 }
  0x3f   :  { %1172 = vmatpush1.bf16.msra.mxu0 %v2355_v52  ;;  %v2385_v52 = vld [vmem:[%s3340_s3 + $0x110] ss:$8 sps:$4 sm:$0xff]  }
  0x40   :  { %1173 = vmatprep.subr.bf16.mxu0 %v2360_v53 }
  0x42   :  { %384 = vmatmul.mubr.bf16.gmra.mrb[16].mxu0 %v2311_v54  ;;  %497 = vmatmul.mubr.bf16.gmra.mrb[16].mxu1 %v2311_v54 }
  0x43   :  { %393 = vmatprep.mubr.bf16.mxu0 %v2454_v1  ;;  %1174 = vmatpush1.bf16.msra.mxu0 %v2358_v55  ;;  %v2390_v55 = vld [vmem:[%s3340_s3 + $0x124] ss:$8 sps:$4 sm:$0xff]  }
  0x44   :  { %1175 = vmatprep.subr.bf16.mxu0 %v2363_v56  ;;  %506 = vmatprep.mubr.bf16.mxu1 %v2454_v1  ;;  %v2798_v56 = vrot.slane %v2746_v13, %v93_v25 }
  0x47   :  { %1176 = vmatpush1.bf16.msra.mxu0 %v2361_v57  ;;  %v2435_v57 = vld [vmem:[%s3342_s5 + $0x10] sm:$0xff]  }
  0x48   :  { %1177 = vmatprep.subr.bf16.mxu0 %v2366_v58  ;;  %2106 = vmatpush3.bf16.msra.mxu1 %v2435_v57 }
  0x4a   :  { %394 = vmatmul.mubr.bf16.gmra.mrb[20].mxu0 %v2318_v59  ;;  %507 = vmatmul.mubr.bf16.gmra.mrb[20].mxu1 %v2318_v59  ;;  %v2436_v59 = vld [vmem:[%s3342_s5 + $0x58] sm:$0xff]  }
  0x4b   :  { %403 = vmatprep.mubr.bf16.mxu0 %v2454_v1  ;;  %1178 = vmatpush1.bf16.msra.mxu0 %v2364_v60 }
  0x4c   :  { %1179 = vmatprep.subr.bf16.mxu0 %v2369_v61  ;;  %516 = vmatprep.mubr.bf16.mxu1 %v2454_v1  ;;  %v2388_v61 = vld [vmem:[%s3340_s3 + $0x120] ss:$8 sps:$4 sm:$0xff]  }
  0x4d   :  { %2107 = vmatprep.subr.bf16.mxu1 %v2436_v59 }
  0x4f   :  { %1180 = vmatpush1.bf16.msra.mxu0 %v2367_v62 }
  0x50   :  { %1181 = vmatprep.subr.bf16.mxu0 %v2372_v63 }
  0x52   :  { %404 = vmatmul.mubr.bf16.gmra.mrb[24].mxu0 %v2325_v0  ;;  %517 = vmatmul.mubr.bf16.gmra.mrb[24].mxu1 %v2325_v0 }
  0x53   :  { %413 = vmatprep.mubr.bf16.mxu0 %v2454_v1  ;;  %1182 = vmatpush1.bf16.msra.mxu0 %v2370_v2  ;;  %v2437_v2 = vld [vmem:[%s3342_s5 + $0x18] sm:$0xff]  }
  0x54   :  { %1183 = vmatprep.subr.bf16.mxu0 %v2375_v3  ;;  %526 = vmatprep.mubr.bf16.mxu1 %v2454_v1  ;;  %v2384_v1 = vld [vmem:[%s3340_s3 + $0x104] ss:$8 sps:$4 sm:$0xff]  }
  0x55   :  { %2108 = vmatpush3.bf16.msra.mxu1 %v2437_v2 }
  0x57   :  { %1184 = vmatpush1.bf16.msra.mxu0 %v2373_v4 }
  0x58   :  { %1185 = vmatprep.subr.bf16.mxu0 %v2378_v6 }
  0x5a   :  { %414 = vmatmul.mubr.bf16.gmra.mrb[28].mxu0 %v2332_v5  ;;  %527 = vmatmul.mubr.bf16.gmra.mrb[28].mxu1 %v2332_v5 }
  0x5b   :  { %1186 = vmatpush1.bf16.msra.mxu0 %v2376_v7 }
  0x5c   :  { %1187 = vmatprep.subr.bf16.mxu0 %v2381_v8 }
  0x5f   :  { %1188 = vmatpush1.bf16.msra.mxu0 %v2379_v9 }
  0x60   :  { %1270 = vmatprep.subr.bf16.mxu0 %v2384_v1 }
  0xf5   :  { %v345_v17 = vpop.f32.mrb[0].mxu0  ;;  %v458_v0 = vpop.f32.mrb[0].mxu1 }
  0xf6   :  { %v346_v18 = vadd.f32 %v345_v17, %v2752_v15  ;;  %v347_v19 = vpop.f32.mrb[1].mxu0  ;;  %v459_v7 = vadd.f32 %v458_v0, %v2798_v56  ;;  %v460_v8 = vpop.f32.mrb[1].mxu1  ;;  %v2819_v17 = vrot.slane %v2746_v13, %v97_v26 }
  0xf7   :  { %v348_v20 = vadd.f32 %v347_v19, %v2757_v16  ;;  %v349_v21 = vpop.f32.mrb[2].mxu0  ;;  %v2438_v19 = vld [vmem:[%s3342_s5 + $0x60] sm:$0xff]  }
  0xf8   :  { %v601_v22 = vmul.f32 0.2, %v346_v18  ;;  %v350_v23 = vadd.f32 %v349_v21, %v2752_v15  ;;  %v351_v24 = vpop.f32.mrb[3].mxu0  ;;  %vm537_vm0 = vcmp.gt.f32.partialorder %v346_v18, 0.0  ;;  %vm539_vm8 = vcmp.gt.f32.partialorder %v459_v7, 0.0  ;;  %2109 = vmatprep.subr.bf16.mxu1 %v2438_v19 }
  0xf9   :  { %vm538_vm1 = vcmp.gt.f32.partialorder %v348_v20, 0.0  ;;  %v602_v27 = vmul.f32 0.2, %v348_v20  ;;  %v352_v28 = vadd.f32 %v351_v24, %v2757_v16  ;;  %2110 = vmatpush3.bf16.msra.mxu1 %v2439_v32 }
  0xfa   :  { %vm541_vm2 = vcmp.gt.f32.partialorder %v350_v23, 0.0  ;;  %v605_v29 = vmul.f32 0.2, %v350_v23  ;;  %v665_v33 = vsel %vm537_vm0, %v346_v18, %v601_v22  ;;  %v462_v18 = vpop.f32.mrb[2].mxu1  ;;  %v2393_v22 = vld [vmem:[%s3340_s3 + $0x134] ss:$8 sps:$4 sm:$0xff]  }
  0xfb   :  { %vm542_vm3 = vcmp.gt.f32.partialorder %v352_v28, 0.0  ;;  %v606_v31 = vmul.f32 0.2, %v352_v28  ;;  %v666_v38 = vsel %vm538_vm1, %v348_v20, %v602_v27  ;;  %v463_v24 = vadd.f32 %v462_v18, %v2798_v56  ;;  %v464_v25 = vpop.f32.mrb[3].mxu1 }
  0xfc   :  { %v669_v34 = vsel %vm541_vm2, %v350_v23, %v605_v29  ;;  %v603_v23 = vmul.f32 0.2, %v459_v7 }
  0xfd   :  { %v729_v36 = vpack.c.bf16 %v669_v34, %v665_v33  ;;  %v355_v37 = vpop.f32.mrb[4].mxu0  ;;  %v670_v39 = vsel %vm542_vm3, %v352_v28, %v606_v31  ;;  %v2391_v28 = vld [vmem:[%s3340_s3 + $0x130] ss:$8 sps:$4 sm:$0xff]   ;;  %v2396_v31 = vld [vmem:[%s3340_s3 + $0x144] ss:$8 sps:$4 sm:$0xff]   ;;  %v461_v34 = vadd.f32 %v460_v8, %v2819_v17  ;;  %vm543_vm13 = vcmp.gt.f32.partialorder %v463_v24, 0.0 }
  0xfe   :  { %v356_v42 = vadd.f32 %v355_v37, %v2752_v15  ;;  %v357_v43 = vpop.f32.mrb[5].mxu0  ;;  %v730_v44 = vpack.c.bf16 %v670_v39, %v666_v38  ;;  %v2845_v37 = vsel %vm539_vm8, %v459_v7, %v603_v23  ;;  %v2441_v38 = vld [vmem:[%s3342_s5 + $0x28] sm:$0xff]  }
  0xff   :  { %v358_v46 = vadd.f32 %v357_v43, %v2757_v16  ;;  %v359_v47 = vpop.f32.mrb[6].mxu0  ;;  %v2394_v39 = vld [vmem:[%s3340_s3 + $0x140] ss:$8 sps:$4 sm:$0xff]   ;;  %v465_v43 = vadd.f32 %v464_v25, %v2819_v17  ;;  %vm540_vm14 = vcmp.gt.f32.partialorder %v461_v34, 0.0 }
 0x100   :  { %vm545_vm4 = vcmp.gt.f32.partialorder %v356_v42, 0.0  ;;  %v609_v49 = vmul.f32 0.2, %v356_v42  ;;  %v360_v50 = vadd.f32 %v359_v47, %v2752_v15  ;;  %v361_v51 = vpop.f32.mrb[7].mxu0  ;;  %1189 = vmatprep.mubr.bf16.mxu0 %v730_v44  ;;  %v468_v44 = vpop.f32.mrb[4].mxu1 }
 0x101   :  { %vm546_vm5 = vcmp.gt.f32.partialorder %v358_v46, 0.0  ;;  %v610_v53 = vmul.f32 0.2, %v358_v46  ;;  %v362_v54 = vadd.f32 %v361_v51, %v2757_v16  ;;  %1190 = vmatmul.mubr.bf16.vlgmr.msra.gmra.mrb[32].mxu0 %v729_v36  ;;  %vm544_vm2 = vcmp.gt.f32.partialorder %v465_v43, 0.0 }
 0x102   :  { %vm549_vm6 = vcmp.gt.f32.partialorder %v360_v50, 0.0  ;;  %v613_v58 = vmul.f32 0.2, %v360_v50  ;;  %1271 = vmatpush1.bf16.msra.mxu0 %v2382_v35  ;;  %v673_v62 = vsel %vm545_vm4, %v356_v42, %v609_v49  ;;  %v2440_v35 = vld [vmem:[%s3342_s5 + $0x68] sm:$0xff]   ;;  %v607_v42 = vmul.f32 0.2, %v463_v24 }
 0x103   :  { %vm550_vm7 = vcmp.gt.f32.partialorder %v362_v54, 0.0  ;;  %v614_v60 = vmul.f32 0.2, %v362_v54  ;;  %1272 = vmatprep.subr.bf16.mxu0 %v2387_v40  ;;  %v674_v4 = vsel %vm546_vm5, %v358_v46, %v610_v53  ;;  %2111 = vmatprep.subr.bf16.mxu1 %v2440_v35 }
 0x104   :  { %v677_v63 = vsel %vm549_vm6, %v360_v50, %v613_v58  ;;  %v470_v50 = vpop.f32.mrb[5].mxu1  ;;  %2112 = vmatpush3.bf16.msra.mxu1 %v2441_v38 }
 0x105   :  { %v365_v3 = vpop.f32.mrb[8].mxu0  ;;  %v678_v5 = vsel %vm550_vm7, %v362_v54, %v614_v60  ;;  %v733_v6 = vpack.c.bf16 %v677_v63, %v673_v62  ;;  %v604_v54 = vmul.f32 0.2, %v461_v34  ;;  %v472_v57 = vpop.f32.mrb[6].mxu1  ;;  %v2399_v60 = vld [vmem:[%s3340_s3 + $0x154] ss:$8 sps:$4 sm:$0xff]   ;;  %v2870_v62 = vadd.f32 %v468_v44, %v2798_v56  ;;  %2113 = vmatprep.subr.bf16.mxu1 %v2442_v45 }
 0x106   :  { %v366_v9 = vadd.f32 %v365_v3, %v2752_v15  ;;  %1273 = vmatpush1.bf16.msra.mxu0 %v2385_v52  ;;  %v367_v1 = vpop.f32.mrb[9].mxu0  ;;  %v734_v10 = vpack.c.bf16 %v678_v5, %v674_v4  ;;  %v474_v63 = vpop.f32.mrb[7].mxu1  ;;  %v2397_v4 = vld [vmem:[%s3340_s3 + $0x150] ss:$8 sps:$4 sm:$0xff]   ;;  %v608_v5 = vmul.f32 0.2, %v465_v43  ;;  %v2896_v25 = vadd.f32 %v472_v57, %v2798_v56 }
 0x107   :  { %v368_v20 = vadd.f32 %v367_v1, %v2757_v16  ;;  %v369_v21 = vpop.f32.mrb[10].mxu0  ;;  %1274 = vmatprep.subr.bf16.mxu0 %v2390_v55  ;;  %v2861_v55 = vsel %vm543_vm13, %v463_v24, %v607_v42  ;;  %v2887_v19 = vmul.f32 0.2, %v2870_v62  ;;  %vm547_vm6 = vcmp.gt.f32.partialorder %v2870_v62, 0.0 }
 0x108   :  { %v617_v13 = vmul.f32 0.2, %v366_v9  ;;  %v370_v26 = vadd.f32 %v369_v21, %v2752_v15  ;;  %v371_v27 = vpop.f32.mrb[11].mxu0  ;;  %1199 = vmatprep.mubr.bf16.mxu0 %v734_v10  ;;  %vm553_vm9 = vcmp.gt.f32.partialorder %v366_v9, 0.0  ;;  %v2884_v10 = vsel %vm540_vm14, %v461_v34, %v604_v54 }
 0x109   :  { %v618_v29 = vmul.f32 0.2, %v368_v20  ;;  %v372_v30 = vadd.f32 %v371_v27, %v2757_v16  ;;  %1200 = vmatmul.mubr.bf16.gmra.mrb[36].mxu0 %v733_v6  ;;  %vm554_vm10 = vcmp.gt.f32.partialorder %v368_v20, 0.0  ;;  %v2443_v6 = vld [vmem:[%s3342_s5 + $0x30] sm:$0xff]   ;;  %vm551_vm7 = vcmp.gt.f32.partialorder %v2896_v25, 0.0 }
 0x10a   :  { %vm557_vm11 = vcmp.gt.f32.partialorder %v370_v26, 0.0  ;;  %v621_v33 = vmul.f32 0.2, %v370_v26  ;;  %1275 = vmatpush1.bf16.msra.mxu0 %v2388_v61  ;;  %v681_v40 = vsel %vm553_vm9, %v366_v9, %v617_v13  ;;  %v731_v61 = vpack.c.bf16 %v2861_v55, %v2845_v37  ;;  %v2402_v9 = vld [vmem:[%s3340_s3 + $0x164] ss:$8 sps:$4 sm:$0xff]   ;;  %v478_v13 = vpop.f32.mrb[8].mxu1  ;;  %2114 = vmatpush3.bf16.msra.mxu1 %v2443_v6 }
 0x10b   :  { %vm558_vm12 = vcmp.gt.f32.partialorder %v372_v30, 0.0  ;;  %v622_v36 = vmul.f32 0.2, %v372_v30  ;;  %1276 = vmatprep.subr.bf16.mxu0 %v2393_v22  ;;  %v682_v47 = vsel %vm554_vm10, %v368_v20, %v618_v29  ;;  %v471_v20 = vadd.f32 %v470_v50, %v2819_v17  ;;  %v2400_v22 = vld [vmem:[%s3340_s3 + $0x160] ss:$8 sps:$4 sm:$0xff]   ;;  %v480_v32 = vpop.f32.mrb[9].mxu1 }
 0x10c   :  { %v685_v41 = vsel %vm557_vm11, %v370_v26, %v621_v33  ;;  %v2405_v29 = vld [vmem:[%s3340_s3 + $0x174] ss:$8 sps:$4 sm:$0xff]   ;;  %v482_v38 = vpop.f32.mrb[10].mxu1  ;;  %v2406_v6 = vld [vmem:[%s3340_s3 + $0x180] ss:$8 sps:$4 sm:$0xff]  }
 0x10d   :  { %v375_v46 = vpop.f32.mrb[12].mxu0  ;;  %v686_v48 = vsel %vm558_vm12, %v372_v30, %v622_v36  ;;  %v737_v49 = vpack.c.bf16 %v685_v41, %v681_v40  ;;  %v475_v30 = vadd.f32 %v474_v63, %v2819_v17  ;;  %vm548_vm4 = vcmp.gt.f32.partialorder %v471_v20, 0.0  ;;  %v484_v42 = vpop.f32.mrb[11].mxu1 }
 0x10e   :  { %v376_v51 = vadd.f32 %v375_v46, %v2752_v15  ;;  %1277 = vmatpush1.bf16.msra.mxu0 %v2391_v28  ;;  %v377_v52 = vpop.f32.mrb[13].mxu0  ;;  %v738_v53 = vpack.c.bf16 %v686_v48, %v682_v47  ;;  %v612_v41 = vmul.f32 0.2, %v471_v20  ;;  %v2403_v46 = vld [vmem:[%s3340_s3 + $0x170] ss:$8 sps:$4 sm:$0xff]   ;;  %v2915_v47 = vadd.f32 %v478_v13, %v2798_v56 }
 0x10f   :  { %v378_v58 = vadd.f32 %v377_v52, %v2757_v16  ;;  %v379_v59 = vpop.f32.mrb[14].mxu0  ;;  %1278 = vmatprep.subr.bf16.mxu0 %v2396_v31  ;;  %v2903_v31 = vsel %vm544_vm2, %v465_v43, %v608_v5  ;;  %vm552_vm8 = vcmp.gt.f32.partialorder %v475_v30, 0.0  ;;  %v616_v50 = vmul.f32 0.2, %v475_v30  ;;  %v2408_v52 = vld [vmem:[%s3340_s3 + $0x184] ss:$8 sps:$4 sm:$0xff]  }
 0x110   :  { %v625_v0 = vmul.f32 0.2, %v376_v51  ;;  %v380_v2 = vadd.f32 %v379_v59, %v2752_v15  ;;  %v381_v3 = vpop.f32.mrb[15].mxu0  ;;  %1209 = vmatprep.mubr.bf16.mxu0 %v738_v53  ;;  %vm561_vm15 = vcmp.gt.f32.partialorder %v376_v51, 0.0  ;;  %v732_v36 = vpack.c.bf16 %v2903_v31, %v2884_v10  ;;  %v2411_v13 = vld [vmem:[%s3340_s3 + $0x194] ss:$8 sps:$4 sm:$0xff]  }
 0x111   :  { %vm562_vm0 = vcmp.gt.f32.partialorder %v378_v58, 0.0  ;;  %v626_v7 = vmul.f32 0.2, %v378_v58  ;;  %v382_v8 = vadd.f32 %v381_v3, %v2757_v16  ;;  %1210 = vmatmul.mubr.bf16.gmra.mrb[40].mxu0 %v737_v49  ;;  %v2923_v53 = vadd.f32 %v480_v32, %v2819_v17 }
 0x112   :  { %vm565_vm1 = vcmp.gt.f32.partialorder %v380_v2, 0.0  ;;  %v629_v1 = vmul.f32 0.2, %v380_v2  ;;  %1279 = vmatpush1.bf16.msra.mxu0 %v2394_v39  ;;  %v689_v23 = vsel %vm561_vm15, %v376_v51, %v625_v0  ;;  %v2931_v63 = vadd.f32 %v484_v42, %v2819_v17 }
 0x113   :  { %vm566_vm3 = vcmp.gt.f32.partialorder %v382_v8, 0.0  ;;  %v630_v18 = vmul.f32 0.2, %v382_v8  ;;  %1280 = vmatprep.subr.bf16.mxu0 %v2399_v60  ;;  %v690_v21 = vsel %vm562_vm0, %v378_v58, %v626_v7  ;;  %v615_v58 = vmul.f32 0.2, %v2896_v25 }
 0x114   :  { %v693_v24 = vsel %vm565_vm1, %v380_v2, %v629_v1  ;;  %v2928_v60 = vadd.f32 %v482_v38, %v2798_v56  ;;  %v2934_v0 = vsel %vm548_vm4, %v471_v20, %v612_v41  ;;  %v488_v2 = vpop.f32.mrb[12].mxu1  ;;  %vm556_vm12 = vcmp.gt.f32.partialorder %v2923_v53, 0.0 }
 0x115   :  { %v385_v26 = vpop.f32.mrb[16].mxu0  ;;  %v694_v27 = vsel %vm566_vm3, %v382_v8, %v630_v18  ;;  %v741_v28 = vpack.c.bf16 %v693_v24, %v689_v23  ;;  %v2941_v8 = vsel %vm552_vm8, %v475_v30, %v616_v50  ;;  %vm560_vm13 = vcmp.gt.f32.partialorder %v2931_v63, 0.0 }
 0x116   :  { %v386_v33 = vadd.f32 %v385_v26, %v2752_v15  ;;  %1281 = vmatpush1.bf16.msra.mxu0 %v2397_v4  ;;  %v387_v34 = vpop.f32.mrb[17].mxu0  ;;  %v742_v35 = vpack.c.bf16 %v694_v27, %v690_v21  ;;  %v2945_v21 = vmul.f32 0.2, %v2915_v47  ;;  %v620_v26 = vmul.f32 0.2, %v2923_v53 }
 0x117   :  { %v388_v39 = vadd.f32 %v387_v34, %v2757_v16  ;;  %v389_v40 = vpop.f32.mrb[18].mxu0  ;;  %1282 = vmatprep.subr.bf16.mxu0 %v2402_v9  ;;  %v490_v9 = vpop.f32.mrb[13].mxu1  ;;  %v736_v27 = vpack.c.bf16 %v2941_v8, %v2934_v0  ;;  %v2409_v34 = vld [vmem:[%s3340_s3 + $0x190] ss:$8 sps:$4 sm:$0xff]   ;;  %vm555_vm0 = vcmp.gt.f32.partialorder %v2915_v47, 0.0  ;;  %vm559_vm1 = vcmp.gt.f32.partialorder %v2928_v60, 0.0 }
 0x118   :  { %vm569_vm5 = vcmp.gt.f32.partialorder %v386_v33, 0.0  ;;  %v633_v43 = vmul.f32 0.2, %v386_v33  ;;  %v390_v44 = vadd.f32 %v389_v40, %v2752_v15  ;;  %v391_v45 = vpop.f32.mrb[19].mxu0  ;;  %1219 = vmatprep.mubr.bf16.mxu0 %v742_v35  ;;  %v2963_v35 = vmul.f32 0.2, %v2928_v60 }
 0x119   :  { %v634_v48 = vmul.f32 0.2, %v388_v39  ;;  %v392_v49 = vadd.f32 %v391_v45, %v2757_v16  ;;  %1220 = vmatmul.mubr.bf16.gmra.mrb[44].mxu0 %v741_v28  ;;  %vm570_vm9 = vcmp.gt.f32.partialorder %v388_v39, 0.0  ;;  %v2956_v28 = vadd.f32 %v488_v2, %v2798_v56  ;;  %v2414_v40 = vld [vmem:[%s3340_s3 + $0x1a4] ss:$8 sps:$4 sm:$0xff]   ;;  %v2444_v8 = vld [vmem:[%s3342_s5 + $0x78] sm:$0xff]  }
 0x11a   :  { %vm573_vm10 = vcmp.gt.f32.partialorder %v390_v44, 0.0  ;;  %v637_v51 = vmul.f32 0.2, %v390_v44  ;;  %1283 = vmatpush1.bf16.msra.mxu0 %v2400_v22  ;;  %v697_v57 = vsel %vm569_vm5, %v386_v33, %v633_v43  ;;  %v492_v22 = vpop.f32.mrb[14].mxu1  ;;  %v624_v42 = vmul.f32 0.2, %v2931_v63  ;;  %2115 = vmatprep.subr.bf16.mxu1 %v2444_v8 }
 0x11b   :  { %vm574_vm11 = vcmp.gt.f32.partialorder %v392_v49, 0.0  ;;  %v638_v54 = vmul.f32 0.2, %v392_v49  ;;  %1284 = vmatprep.subr.bf16.mxu0 %v2405_v29  ;;  %v698_v4 = vsel %vm570_vm9, %v388_v39, %v634_v48  ;;  %v494_v29 = vpop.f32.mrb[15].mxu1  ;;  %v2974_v43 = vadd.f32 %v490_v9, %v2819_v17 }
 0x11c   :  { %v701_v59 = vsel %vm573_vm10, %v390_v44, %v637_v51  ;;  %v2977_v45 = vmul.f32 0.2, %v2956_v28  ;;  %v2990_v51 = vsel %vm551_vm7, %v2896_v25, %v615_v58  ;;  %v2412_v25 = vld [vmem:[%s3340_s3 + $0x1a0] ss:$8 sps:$4 sm:$0xff]   ;;  %v3003_v58 = vadd.f32 %v494_v29, %v2819_v17 }
 0x11d   :  { %v395_v3 = vpop.f32.mrb[20].mxu0  ;;  %v702_v5 = vsel %vm574_vm11, %v392_v49, %v638_v54  ;;  %v745_v7 = vpack.c.bf16 %v701_v59, %v697_v57  ;;  %vm564_vm4 = vcmp.gt.f32.partialorder %v2974_v43, 0.0  ;;  %vm563_vm10 = vcmp.gt.f32.partialorder %v2956_v28, 0.0 }
 0x11e   :  { %v396_v1 = vadd.f32 %v395_v3, %v2752_v15  ;;  %1285 = vmatpush1.bf16.msra.mxu0 %v2403_v46  ;;  %v397_v18 = vpop.f32.mrb[21].mxu0  ;;  %v746_v20 = vpack.c.bf16 %v702_v5, %v698_v4  ;;  %v2983_v46 = vsel %vm547_vm6, %v2870_v62, %v2887_v19  ;;  %v2995_v62 = vadd.f32 %v492_v22, %v2798_v56 }
 0x11f   :  { %v398_v23 = vadd.f32 %v397_v18, %v2757_v16  ;;  %v399_v24 = vpop.f32.mrb[22].mxu0  ;;  %1286 = vmatprep.subr.bf16.mxu0 %v2408_v52  ;;  %v498_v52 = vpop.f32.mrb[16].mxu1  ;;  %v735_v2 = vpack.c.bf16 %v2990_v51, %v2983_v46  ;;  %v3010_v18 = vmul.f32 0.2, %v2974_v43  ;;  %v3020_v22 = vsel %vm560_vm13, %v2931_v63, %v624_v42  ;;  %v2415_v63 = vld [vmem:[%s3340_s3 + $0x1b0] ss:$8 sps:$4 sm:$0xff]  }
 0x120   :  { %v641_v30 = vmul.f32 0.2, %v396_v1  ;;  %v400_v32 = vadd.f32 %v399_v24, %v2752_v15  ;;  %v401_v33 = vpop.f32.mrb[23].mxu0  ;;  %1229 = vmatprep.mubr.bf16.mxu0 %v746_v20  ;;  %vm577_vm14 = vcmp.gt.f32.partialorder %v396_v1, 0.0  ;;  %v500_v19 = vpop.f32.mrb[17].mxu1  ;;  %v3015_v20 = vsel %vm556_vm12, %v2923_v53, %v620_v26  ;;  %v2446_v46 = vld [vmem:[%s3343_s7] sm:$0xff]  }
 0x121   :  { %vm578_vm15 = vcmp.gt.f32.partialorder %v398_v23, 0.0  ;;  %v642_v38 = vmul.f32 0.2, %v398_v23  ;;  %v402_v39 = vadd.f32 %v401_v33, %v2757_v16  ;;  %1230 = vmatmul.mubr.bf16.gmra.mrb[48].mxu0 %v745_v7  ;;  %vm568_vm7 = vcmp.gt.f32.partialorder %v3003_v58, 0.0  ;;  %v825_v51 = vld [vmem:[%s3344_s4] sm:$0x3] }
 0x122   :  { %vm581_vm2 = vcmp.gt.f32.partialorder %v400_v32, 0.0  ;;  %v645_v41 = vmul.f32 0.2, %v400_v32  ;;  %1287 = vmatpush1.bf16.msra.mxu0 %v2406_v6  ;;  %v705_v49 = vsel %vm577_vm14, %v396_v1, %v641_v30  ;;  %v502_v6 = vpop.f32.mrb[18].mxu1  ;;  %v2417_v1 = vld [vmem:[%s3340_s3 + $0x1b4] ss:$8 sps:$4 sm:$0xff]  }
 0x123   :  { %vm582_vm3 = vcmp.gt.f32.partialorder %v402_v39, 0.0  ;;  %v646_v44 = vmul.f32 0.2, %v402_v39  ;;  %1288 = vmatprep.subr.bf16.mxu0 %v2411_v13  ;;  %v706_v48 = vsel %vm578_vm15, %v398_v23, %v642_v38  ;;  %v504_v23 = vpop.f32.mrb[19].mxu1  ;;  %v3024_v30 = vmul.f32 0.2, %v2995_v62 }
 0x124   :  { %v709_v50 = vsel %vm581_vm2, %v400_v32, %v645_v41  ;;  %v3032_v33 = vmul.f32 0.2, %v3003_v58  ;;  %v3042_v41 = vadd.f32 %v498_v52, %v2798_v56  ;;  %vm567_vm11 = vcmp.gt.f32.partialorder %v2995_v62, 0.0 }
 0x125   :  { %v405_v54 = vpop.f32.mrb[24].mxu0  ;;  %v710_v57 = vsel %vm582_vm3, %v402_v39, %v646_v44  ;;  %v749_v59 = vpack.c.bf16 %v709_v50, %v705_v49  ;;  %v2420_v39 = vld [vmem:[%s3340_s3 + $0x1c4] ss:$8 sps:$4 sm:$0xff]   ;;  %v3046_v44 = vadd.f32 %v500_v19, %v2819_v17  ;;  %v3058_v49 = vsel %vm559_vm1, %v2928_v60, %v2963_v35  ;;  %v508_v50 = vpop.f32.mrb[20].mxu1 }
 0x126   :  { %v406_v3 = vadd.f32 %v405_v54, %v2752_v15  ;;  %1289 = vmatpush1.bf16.msra.mxu0 %v2409_v34  ;;  %v407_v4 = vpop.f32.mrb[25].mxu0  ;;  %v750_v5 = vpack.c.bf16 %v710_v57, %v706_v48  ;;  %v740_v34 = vpack.c.bf16 %v3020_v22, %v3015_v20  ;;  %v3052_v48 = vsel %vm555_vm0, %v2915_v47, %v2945_v21  ;;  %v510_v47 = vpop.f32.mrb[21].mxu1 }
 0x127   :  { %v408_v7 = vadd.f32 %v407_v4, %v2757_v16  ;;  %v409_v9 = vpop.f32.mrb[26].mxu0  ;;  %1290 = vmatprep.subr.bf16.mxu0 %v2414_v40  ;;  %vm572_vm12 = vcmp.gt.f32.partialorder %v3046_v44, 0.0  ;;  %v636_v35 = vmul.f32 0.2, %v3046_v44  ;;  %vm571_vm13 = vcmp.gt.f32.partialorder %v3042_v41, 0.0 }
 0x128   :  { %vm585_vm5 = vcmp.gt.f32.partialorder %v406_v3, 0.0  ;;  %v649_v24 = vmul.f32 0.2, %v406_v3  ;;  %v410_v13 = vadd.f32 %v409_v9, %v2752_v15  ;;  %v411_v29 = vpop.f32.mrb[27].mxu0  ;;  %1239 = vmatprep.mubr.bf16.mxu0 %v750_v5  ;;  %v512_v5 = vpop.f32.mrb[22].mxu1  ;;  %v3211_v20 = vrot.slane %v825_v51, %v89_v14 }
 0x129   :  { %vm586_vm6 = vcmp.gt.f32.partialorder %v408_v7, 0.0  ;;  %v650_v32 = vmul.f32 0.2, %v408_v7  ;;  %v412_v53 = vadd.f32 %v411_v29, %v2757_v16  ;;  %1240 = vmatmul.mubr.bf16.gmra.mrb[52].mxu0 %v749_v59  ;;  %v2418_v59 = vld [vmem:[%s3340_s3 + $0x1c0] ss:$8 sps:$4 sm:$0xff]   ;;  %v514_v29 = vpop.f32.mrb[23].mxu1 }
 0x12a   :  { %vm589_vm8 = vcmp.gt.f32.partialorder %v410_v13, 0.0  ;;  %v653_v26 = vmul.f32 0.2, %v410_v13  ;;  %1291 = vmatpush1.bf16.msra.mxu0 %v2412_v25  ;;  %v713_v40 = vsel %vm585_vm5, %v406_v3, %v649_v24  ;;  %v3065_v3 = vmul.f32 0.2, %v3042_v41 }
 0x12b   :  { %vm590_vm9 = vcmp.gt.f32.partialorder %v412_v53, 0.0  ;;  %v654_v38 = vmul.f32 0.2, %v412_v53  ;;  %1292 = vmatprep.subr.bf16.mxu0 %v2417_v1  ;;  %v714_v54 = vsel %vm586_vm6, %v408_v7, %v650_v32  ;;  %v2423_v9 = vld [vmem:[%s3340_s3 + $0x1d4] ss:$8 sps:$4 sm:$0xff]   ;;  %v739_v1 = vpack.c.bf16 %v3058_v49, %v3052_v48 }
 0x12c   :  { %v717_v42 = vsel %vm589_vm8, %v410_v13, %v653_v26  ;;  %v3078_v24 = vadd.f32 %v502_v6, %v2798_v56  ;;  %v505_v13 = vadd.f32 %v504_v23, %v2819_v17  ;;  %v3086_v26 = vsel %vm564_vm4, %v2974_v43, %v3010_v18  ;;  %v2421_v23 = vld [vmem:[%s3340_s3 + $0x1d0] ss:$8 sps:$4 sm:$0xff]  }
 0x12d   :  { %v415_v52 = vpop.f32.mrb[28].mxu0  ;;  %v718_v57 = vsel %vm590_vm9, %v412_v53, %v654_v38  ;;  %v753_v19 = vpack.c.bf16 %v717_v42, %v713_v40 }
 0x12e   :  { %v416_v21 = vadd.f32 %v415_v52, %v2752_v15  ;;  %1293 = vmatpush1.bf16.msra.mxu0 %v2415_v63  ;;  %v417_v4 = vpop.f32.mrb[29].mxu0  ;;  %v754_v60 = vpack.c.bf16 %v718_v57, %v714_v54  ;;  %vm575_vm0 = vcmp.gt.f32.partialorder %v3078_v24, 0.0  ;;  %v639_v40 = vmul.f32 0.2, %v3078_v24 }
 0x12f   :  { %v418_v25 = vadd.f32 %v417_v4, %v2757_v16  ;;  %v419_v7 = vpop.f32.mrb[30].mxu0  ;;  %1294 = vmatprep.subr.bf16.mxu0 %v2420_v39  ;;  %vm576_vm3 = vcmp.gt.f32.partialorder %v505_v13, 0.0  ;;  %v640_v52 = vmul.f32 0.2, %v505_v13  ;;  %v3101_v54 = vsel %vm568_vm7, %v3003_v58, %v3032_v33 }
 0x130   :  { %vm593_vm14 = vcmp.gt.f32.partialorder %v416_v21, 0.0  ;;  %v657_v32 = vmul.f32 0.2, %v416_v21  ;;  %v420_v53 = vadd.f32 %v419_v7, %v2752_v15  ;;  %v421_v63 = vpop.f32.mrb[31].mxu0  ;;  %1249 = vmatprep.mubr.bf16.mxu0 %v754_v60  ;;  %v509_v57 = vadd.f32 %v508_v50, %v2798_v56 }
 0x131   :  { %vm594_vm15 = vcmp.gt.f32.partialorder %v418_v25, 0.0  ;;  %v658_v38 = vmul.f32 0.2, %v418_v25  ;;  %v422_v6 = vadd.f32 %v421_v63, %v2757_v16  ;;  %1250 = vmatmul.mubr.bf16.gmra.mrb[56].mxu0 %v753_v19  ;;  %v2426_v16 = vld [vmem:[%s3340_s3 + $0x1e4] ss:$8 sps:$4 sm:$0xff]   ;;  %v744_v4 = vpack.c.bf16 %v3101_v54, %v3086_v26 }
 0x132   :  { %vm597_vm1 = vcmp.gt.f32.partialorder %v420_v53, 0.0  ;;  %v661_v15 = vmul.f32 0.2, %v420_v53  ;;  %1295 = vmatpush1.bf16.msra.mxu0 %v2418_v59  ;;  %v721_v39 = vsel %vm593_vm14, %v416_v21, %v657_v32  ;;  %v518_v59 = vpop.f32.mrb[24].mxu1  ;;  %v511_v60 = vadd.f32 %v510_v47, %v2819_v17  ;;  %v2429_v47 = vld [vmem:[%s3340_s3 + $0x1f4] ss:$8 sps:$4 sm:$0xff]  }
 0x133   :  { %vm598_vm2 = vcmp.gt.f32.partialorder %v422_v6, 0.0  ;;  %v662_v43 = vmul.f32 0.2, %v422_v6  ;;  %1296 = vmatprep.subr.bf16.mxu0 %v2423_v9  ;;  %v722_v18 = vsel %vm594_vm15, %v418_v25, %v658_v38  ;;  %v520_v25 = vpop.f32.mrb[25].mxu1  ;;  %v2424_v9 = vld [vmem:[%s3340_s3 + $0x1e0] ss:$8 sps:$4 sm:$0xff]   ;;  %v3114_v33 = vsel %vm563_vm10, %v2956_v28, %v2977_v45 }
 0x134   :  { %v725_v42 = vsel %vm597_vm1, %v420_v53, %v661_v15  ;;  %vm579_vm4 = vcmp.gt.f32.partialorder %v509_v57, 0.0  ;;  %v643_v58 = vmul.f32 0.2, %v509_v57  ;;  %v522_v50 = vpop.f32.mrb[26].mxu1  ;;  %vm580_vm5 = vcmp.gt.f32.partialorder %v511_v60, 0.0 }
 0x135   :  { %v726_v19 = vsel %vm598_vm2, %v422_v6, %v662_v43  ;;  %v757_v21 = vpack.c.bf16 %v725_v42, %v721_v39  ;;  %v644_v32 = vmul.f32 0.2, %v511_v60  ;;  %v3123_v53 = vsel %vm567_vm11, %v2995_v62, %v3024_v30  ;;  %v524_v38 = vpop.f32.mrb[27].mxu1 }
 0x136   :  { %1297 = vmatpush1.bf16.msra.mxu0 %v2421_v23  ;;  %v758_v7 = vpack.c.bf16 %v726_v19, %v722_v18  ;;  %v513_v63 = vadd.f32 %v512_v5, %v2798_v56  ;;  %v743_v28 = vpack.c.bf16 %v3123_v53, %v3114_v33  ;;  %v515_v45 = vadd.f32 %v514_v29, %v2819_v17  ;;  %v528_v18 = vpop.f32.mrb[28].mxu1 }
 0x137   :  { %1298 = vmatprep.subr.bf16.mxu0 %v2426_v16  ;;  %v3132_v6 = vsel %vm572_vm12, %v3046_v44, %v636_v35  ;;  %v3135_v23 = vsel %vm576_vm3, %v505_v13, %v640_v52  ;;  %v519_v5 = vadd.f32 %v518_v59, %v2798_v56  ;;  %v2427_v44 = vld [vmem:[%s3340_s3 + $0x1f0] ss:$8 sps:$4 sm:$0xff]   ;;  %v521_v13 = vadd.f32 %v520_v25, %v2819_v17 }
 0x138   :  { %1259 = vmatprep.mubr.bf16.mxu0 %v758_v7  ;;  %vm583_vm6 = vcmp.gt.f32.partialorder %v513_v63, 0.0  ;;  %v647_v62 = vmul.f32 0.2, %v513_v63  ;;  %v748_v30 = vpack.c.bf16 %v3135_v23, %v3132_v6  ;;  %vm584_vm7 = vcmp.gt.f32.partialorder %v515_v45, 0.0 }
 0x139   :  { %1260 = vmatmul.mubr.bf16.gmra.mrb[60].mxu0 %v757_v21  ;;  %v648_v35 = vmul.f32 0.2, %v515_v45  ;;  %v699_v29 = vsel %vm571_vm13, %v3042_v41, %v3065_v3  ;;  %vm587_vm8 = vcmp.gt.f32.partialorder %v519_v5, 0.0  ;;  %v651_v15 = vmul.f32 0.2, %v519_v5  ;;  %v530_v3 = vpop.f32.mrb[29].mxu1 }
 0x13a   :  { %1299 = vmatpush1.bf16.msra.mxu0 %v2424_v9  ;;  %1302 = vmatprep.mubr.bf16.mxu0 %v732_v36  ;;  %v703_v10 = vsel %vm575_vm0, %v3078_v24, %v639_v40  ;;  %v523_v31 = vadd.f32 %v522_v50, %v2798_v56  ;;  %vm588_vm9 = vcmp.gt.f32.partialorder %v521_v13, 0.0  ;;  %v652_v36 = vmul.f32 0.2, %v521_v13  ;;  %v532_v40 = vpop.f32.mrb[30].mxu1 }
 0x13b   :  { %1300 = vmatprep.subr.bf16.mxu0 %v2429_v47  ;;  %v747_v39 = vpack.c.bf16 %v703_v10, %v699_v29  ;;  %v525_v43 = vadd.f32 %v524_v38, %v2819_v17  ;;  %v708_v42 = vsel %vm580_vm5, %v511_v60, %v644_v32  ;;  %v712_v41 = vsel %vm584_vm7, %v515_v45, %v648_v35  ;;  %v534_v9 = vpop.f32.mrb[31].mxu1 }
 0x13c   :  { %vm591_vm10 = vcmp.gt.f32.partialorder %v523_v31, 0.0  ;;  %v655_v16 = vmul.f32 0.2, %v523_v31  ;;  %v752_v59 = vpack.c.bf16 %v712_v41, %v708_v42  ;;  %v529_v24 = vadd.f32 %v528_v18, %v2798_v56 }
 0x13d   :  { %vm592_vm11 = vcmp.gt.f32.partialorder %v525_v43, 0.0  ;;  %v656_v52 = vmul.f32 0.2, %v525_v43  ;;  %v531_v19 = vadd.f32 %v530_v3, %v2819_v17  ;;  %v707_v21 = vsel %vm579_vm4, %v509_v57, %v643_v58 }
 0x13e   :  { %1301 = vmatpush1.bf16.msra.mxu0 %v2427_v44  ;;  %v711_v25 = vsel %vm583_vm6, %v513_v63, %v647_v62  ;;  %v533_v7 = vadd.f32 %v532_v40, %v2798_v56  ;;  %vm595_vm12 = vcmp.gt.f32.partialorder %v529_v24, 0.0  ;;  %v659_v60 = vmul.f32 0.2, %v529_v24 }
 0x13f   :  { %v751_v50 = vpack.c.bf16 %v711_v25, %v707_v21  ;;  %v535_v47 = vadd.f32 %v534_v9, %v2819_v17  ;;  %vm596_vm13 = vcmp.gt.f32.partialorder %v531_v19, 0.0  ;;  %v660_v32 = vmul.f32 0.2, %v531_v19 }
 0x140   :  { %vm599_vm14 = vcmp.gt.f32.partialorder %v533_v7, 0.0  ;;  %v663_v38 = vmul.f32 0.2, %v533_v7  ;;  %v716_v57 = vsel %vm588_vm9, %v521_v13, %v652_v36  ;;  %v720_v58 = vsel %vm592_vm11, %v525_v43, %v656_v52  ;;  %v2447_v36 = vld [vmem:[%s3343_s7 + $0x8] sm:$0xff]   ;;  %v2448_v52 = vld [vmem:[%s3343_s7 + $0x10] sm:$0xff]  }
 0x141   :  { %1303 = vmatmul.mubr.bf16.vlgmr.msra.gmra.mrb[32].mxu0 %v731_v61  ;;  %vm600_vm15 = vcmp.gt.f32.partialorder %v535_v47, 0.0  ;;  %v664_v56 = vmul.f32 0.2, %v535_v47  ;;  %v756_v63 = vpack.c.bf16 %v720_v58, %v716_v57  ;;  %v715_v17 = vsel %vm587_vm8, %v519_v5, %v651_v15 }
 0x142   :  { %1312 = vmatprep.mubr.bf16.mxu0 %v736_v27  ;;  %v719_v37 = vsel %vm591_vm10, %v523_v31, %v655_v16  ;;  %v724_v55 = vsel %vm596_vm13, %v531_v19, %v660_v32  ;;  %v723_v62 = vsel %vm595_vm12, %v529_v24, %v659_v60  ;;  %v727_v44 = vsel %vm599_vm14, %v533_v7, %v663_v38  ;;  %v2445_v27 = vld [vmem:[%s3342_s5 + $0x38] sm:$0xff]  }
 0x143   :  { %v755_v61 = vpack.c.bf16 %v719_v37, %v715_v17  ;;  %v728_v45 = vsel %vm600_vm15, %v535_v47, %v664_v56  ;;  %v759_v0 = vpack.c.bf16 %v727_v44, %v723_v62  ;;  %2116 = vmatpush3.bf16.msra.mxu1 %v2445_v27 }
 0x144   :  { %v760_v35 = vpack.c.bf16 %v728_v45, %v724_v55  ;;  %2181 = vmatprep.subr.bf16.mxu1 %v2446_v46 }
 0x149   :  { %1313 = vmatmul.mubr.bf16.gmra.mrb[36].mxu0 %v735_v2  ;;  %v3207_v2 = vrot.slane %v825_v51, %v85_v12 }
 0x14a   :  { %1322 = vmatprep.mubr.bf16.mxu0 %v740_v34 }
 0x151   :  { %1323 = vmatmul.mubr.bf16.gmra.mrb[40].mxu0 %v739_v1 }
 0x152   :  { %1332 = vmatprep.mubr.bf16.mxu0 %v744_v4 }
 0x159   :  { %1333 = vmatmul.mubr.bf16.gmra.mrb[44].mxu0 %v743_v28 }
 0x15a   :  { %1342 = vmatprep.mubr.bf16.mxu0 %v748_v30 }
 0x161   :  { %1343 = vmatmul.mubr.bf16.gmra.mrb[48].mxu0 %v747_v39 }
 0x162   :  { %1352 = vmatprep.mubr.bf16.mxu0 %v752_v59 }
 0x169   :  { %1353 = vmatmul.mubr.bf16.gmra.mrb[52].mxu0 %v751_v50 }
 0x16a   :  { %1362 = vmatprep.mubr.bf16.mxu0 %v756_v63 }
 0x171   :  { %1363 = vmatmul.mubr.bf16.gmra.mrb[56].mxu0 %v755_v61 }
 0x172   :  { %1372 = vmatprep.mubr.bf16.mxu0 %v760_v35 }
 0x179   :  { %1373 = vmatmul.mubr.bf16.gmra.mrb[60].mxu0 %v759_v0 }
 0x214   :  { %v1304_v22 = vpop.f32.mrb[32].mxu0 }
 0x215   :  { %v2213_v34 = vadd.f32 %v1304_v22, %v3207_v2  ;;  %v1306_v48 = vpop.f32.mrb[33].mxu0 }
 0x216   :  { %v2214_v49 = vadd.f32 %v1306_v48, %v3211_v20  ;;  %v1308_v1 = vpop.f32.mrb[34].mxu0 }
 0x217   :  { %v1415_v26 = vmul.f32 0.2, %v2213_v34  ;;  %v2215_v54 = vadd.f32 %v1308_v1, %v3207_v2  ;;  %v1310_v4 = vpop.f32.mrb[35].mxu0  ;;  %vm1383_vm0 = vcmp.gt.f32.partialorder %v2213_v34, 0.0 }
 0x218   :  { %v1416_v33 = vmul.f32 0.2, %v2214_v49  ;;  %v2216_v12 = vadd.f32 %v1310_v4, %v3211_v20  ;;  %vm1384_vm1 = vcmp.gt.f32.partialorder %v2214_v49, 0.0 }
 0x219   :  { %vm1385_vm2 = vcmp.gt.f32.partialorder %v2215_v54, 0.0  ;;  %v1417_v11 = vmul.f32 0.2, %v2215_v54  ;;  %v1447_v53 = vsel %vm1383_vm0, %v2213_v34, %v1415_v26 }
 0x21a   :  { %vm1386_vm3 = vcmp.gt.f32.partialorder %v2216_v12, 0.0  ;;  %v1418_v14 = vmul.f32 0.2, %v2216_v12  ;;  %v1448_v30 = vsel %vm1384_vm1, %v2214_v49, %v1416_v33 }
 0x21b   :  { %v1449_v28 = vsel %vm1385_vm2, %v2215_v54, %v1417_v11 }
 0x21c   :  { %v1479_v6 = vpack.c.bf16 %v1449_v28, %v1447_v53  ;;  %v1314_v23 = vpop.f32.mrb[36].mxu0  ;;  %v1450_v5 = vsel %vm1386_vm3, %v2216_v12, %v1418_v14 }
 0x21d   :  { %v2217_v13 = vadd.f32 %v1314_v23, %v3207_v2  ;;  %v1316_v29 = vpop.f32.mrb[37].mxu0  ;;  %v1480_v15 = vpack.c.bf16 %v1450_v5, %v1448_v30 }
 0x21e   :  { %v2218_v10 = vadd.f32 %v1316_v29, %v3211_v20  ;;  %v1318_v31 = vpop.f32.mrb[38].mxu0 }
 0x21f   :  { %v1419_v39 = vmul.f32 0.2, %v2217_v13  ;;  %v2219_v43 = vadd.f32 %v1318_v31, %v3207_v2  ;;  %v1320_v18 = vpop.f32.mrb[39].mxu0  ;;  %1662 = vmatprep.mubr.bf16.mxu1 %v1480_v15  ;;  %vm1387_vm4 = vcmp.gt.f32.partialorder %v2217_v13, 0.0 }
 0x220   :  { %v1420_v16 = vmul.f32 0.2, %v2218_v10  ;;  %v2220_v42 = vadd.f32 %v1320_v18, %v3211_v20  ;;  %1663 = vmatmul.mubr.bf16.vlgmr.msra.gmra.mrb[32].mxu1 %v1479_v6  ;;  %vm1388_vm5 = vcmp.gt.f32.partialorder %v2218_v10, 0.0 }
 0x221   :  { %vm1389_vm6 = vcmp.gt.f32.partialorder %v2219_v43, 0.0  ;;  %v1421_v41 = vmul.f32 0.2, %v2219_v43  ;;  %2182 = vmatpush3.bf16.msra.mxu1 %v2446_v46  ;;  %v1451_v59 = vsel %vm1387_vm4, %v2217_v13, %v1419_v39 }
 0x222   :  { %vm1390_vm7 = vcmp.gt.f32.partialorder %v2220_v42, 0.0  ;;  %v1422_v3 = vmul.f32 0.2, %v2220_v42  ;;  %2183 = vmatprep.subr.bf16.mxu1 %v2447_v36  ;;  %v1452_v19 = vsel %vm1388_vm5, %v2218_v10, %v1420_v16 }
 0x223   :  { %v1453_v24 = vsel %vm1389_vm6, %v2219_v43, %v1421_v41 }
 0x224   :  { %v1324_v40 = vpop.f32.mrb[40].mxu0  ;;  %v1454_v21 = vsel %vm1390_vm7, %v2220_v42, %v1422_v3  ;;  %v1481_v25 = vpack.c.bf16 %v1453_v24, %v1451_v59 }
 0x225   :  { %v2221_v7 = vadd.f32 %v1324_v40, %v3207_v2  ;;  %v1326_v9 = vpop.f32.mrb[41].mxu0  ;;  %v1482_v60 = vpack.c.bf16 %v1454_v21, %v1452_v19  ;;  %2184 = vmatpush3.bf16.msra.mxu1 %v2447_v36 }
 0x226   :  { %v2222_v50 = vadd.f32 %v1326_v9, %v3211_v20  ;;  %v1328_v47 = vpop.f32.mrb[42].mxu0  ;;  %2185 = vmatprep.subr.bf16.mxu1 %v2448_v52 }
 0x227   :  { %v1423_v32 = vmul.f32 0.2, %v2221_v7  ;;  %v2223_v38 = vadd.f32 %v1328_v47, %v3207_v2  ;;  %v1330_v56 = vpop.f32.mrb[43].mxu0  ;;  %1670 = vmatprep.mubr.bf16.mxu1 %v1482_v60  ;;  %vm1391_vm8 = vcmp.gt.f32.partialorder %v2221_v7, 0.0 }
 0x228   :  { %v1424_v57 = vmul.f32 0.2, %v2222_v50  ;;  %v2224_v58 = vadd.f32 %v1330_v56, %v3211_v20  ;;  %1671 = vmatmul.mubr.bf16.gmra.mrb[36].mxu1 %v1481_v25  ;;  %vm1392_vm9 = vcmp.gt.f32.partialorder %v2222_v50, 0.0 }
 0x229   :  { %vm1393_vm10 = vcmp.gt.f32.partialorder %v2223_v38, 0.0  ;;  %v1425_v63 = vmul.f32 0.2, %v2223_v38  ;;  %2186 = vmatpush3.bf16.msra.mxu1 %v2448_v52  ;;  %v1455_v37 = vsel %vm1391_vm8, %v2221_v7, %v1423_v32 }
 0x22a   :  { %vm1394_vm11 = vcmp.gt.f32.partialorder %v2224_v58, 0.0  ;;  %v1426_v17 = vmul.f32 0.2, %v2224_v58  ;;  %v1456_v45 = vsel %vm1392_vm9, %v2222_v50, %v1424_v57 }
 0x22b   :  { %v1457_v55 = vsel %vm1393_vm10, %v2223_v38, %v1425_v63 }
 0x22c   :  { %v1334_v61 = vpop.f32.mrb[44].mxu0  ;;  %v1458_v62 = vsel %vm1394_vm11, %v2224_v58, %v1426_v17  ;;  %v1483_v44 = vpack.c.bf16 %v1457_v55, %v1455_v37 }
 0x22d   :  { %v2225_v35 = vadd.f32 %v1334_v61, %v3207_v2  ;;  %v1336_v0 = vpop.f32.mrb[45].mxu0  ;;  %v1484_v8 = vpack.c.bf16 %v1458_v62, %v1456_v45 }
 0x22e   :  { %v2226_v27 = vadd.f32 %v1336_v0, %v3211_v20  ;;  %v1338_v46 = vpop.f32.mrb[46].mxu0 }
 0x22f   :  { %v1427_v51 = vmul.f32 0.2, %v2225_v35  ;;  %v2227_v22 = vadd.f32 %v1338_v46, %v3207_v2  ;;  %v1340_v34 = vpop.f32.mrb[47].mxu0  ;;  %1678 = vmatprep.mubr.bf16.mxu1 %v1484_v8  ;;  %vm1395_vm12 = vcmp.gt.f32.partialorder %v2225_v35, 0.0 }
 0x230   :  { %v1428_v48 = vmul.f32 0.2, %v2226_v27  ;;  %v2228_v49 = vadd.f32 %v1340_v34, %v3211_v20  ;;  %1679 = vmatmul.mubr.bf16.gmra.mrb[40].mxu1 %v1483_v44  ;;  %vm1396_vm13 = vcmp.gt.f32.partialorder %v2226_v27, 0.0 }
 0x231   :  { %vm1397_vm14 = vcmp.gt.f32.partialorder %v2227_v22, 0.0  ;;  %v1429_v1 = vmul.f32 0.2, %v2227_v22  ;;  %v1459_v54 = vsel %vm1395_vm12, %v2225_v35, %v1427_v51 }
 0x232   :  { %vm1398_vm15 = vcmp.gt.f32.partialorder %v2228_v49, 0.0  ;;  %v1430_v26 = vmul.f32 0.2, %v2228_v49  ;;  %v1460_v12 = vsel %vm1396_vm13, %v2226_v27, %v1428_v48 }
 0x233   :  { %v1461_v4 = vsel %vm1397_vm14, %v2227_v22, %v1429_v1 }
 0x234   :  { %v1344_v33 = vpop.f32.mrb[48].mxu0  ;;  %v1462_v11 = vsel %vm1398_vm15, %v2228_v49, %v1430_v26  ;;  %v1485_v14 = vpack.c.bf16 %v1461_v4, %v1459_v54 }
 0x235   :  { %v2229_v53 = vadd.f32 %v1344_v33, %v3207_v2  ;;  %v1346_v28 = vpop.f32.mrb[49].mxu0  ;;  %v1486_v6 = vpack.c.bf16 %v1462_v11, %v1460_v12 }
 0x236   :  { %v2230_v23 = vadd.f32 %v1346_v28, %v3211_v20  ;;  %v1348_v30 = vpop.f32.mrb[50].mxu0 }
 0x237   :  { %v1431_v5 = vmul.f32 0.2, %v2229_v53  ;;  %v2231_v13 = vadd.f32 %v1348_v30, %v3207_v2  ;;  %v1350_v29 = vpop.f32.mrb[51].mxu0  ;;  %1686 = vmatprep.mubr.bf16.mxu1 %v1486_v6  ;;  %vm1399_vm0 = vcmp.gt.f32.partialorder %v2229_v53, 0.0 }
 0x238   :  { %v1432_v15 = vmul.f32 0.2, %v2230_v23  ;;  %v2232_v10 = vadd.f32 %v1350_v29, %v3211_v20  ;;  %1687 = vmatmul.mubr.bf16.gmra.mrb[44].mxu1 %v1485_v14  ;;  %vm1400_vm1 = vcmp.gt.f32.partialorder %v2230_v23, 0.0 }
 0x239   :  { %vm1401_vm2 = vcmp.gt.f32.partialorder %v2231_v13, 0.0  ;;  %v1433_v31 = vmul.f32 0.2, %v2231_v13  ;;  %v1463_v39 = vsel %vm1399_vm0, %v2229_v53, %v1431_v5 }
 0x23a   :  { %vm1402_vm3 = vcmp.gt.f32.partialorder %v2232_v10, 0.0  ;;  %v1434_v36 = vmul.f32 0.2, %v2232_v10  ;;  %v1464_v16 = vsel %vm1400_vm1, %v2230_v23, %v1432_v15 }
 0x23b   :  { %v1465_v43 = vsel %vm1401_vm2, %v2231_v13, %v1433_v31  ;;  %v2451_v31 = vld [vmem:[%s3343_s7 + $0x28] sm:$0xff]  }
 0x23c   :  { %v1354_v18 = vpop.f32.mrb[52].mxu0  ;;  %v1466_v42 = vsel %vm1402_vm3, %v2232_v10, %v1434_v36  ;;  %v1487_v41 = vpack.c.bf16 %v1465_v43, %v1463_v39  ;;  %v2452_v36 = vld [vmem:[%s3343_s7 + $0x30] sm:$0xff]   ;;  %v2453_v39 = vld [vmem:[%s3343_s7 + $0x38] sm:$0xff]  }
 0x23d   :  { %v2233_v3 = vadd.f32 %v1354_v18, %v3207_v2  ;;  %v1356_v52 = vpop.f32.mrb[53].mxu0  ;;  %v1488_v59 = vpack.c.bf16 %v1466_v42, %v1464_v16  ;;  %v3269_v18 = vld [vmem:[%s3345_s6] ss:$0 sm:$0xff] }
 0x23e   :  { %v2234_v24 = vadd.f32 %v1356_v52, %v3211_v20  ;;  %v1358_v40 = vpop.f32.mrb[54].mxu0 }
 0x23f   :  { %v1435_v19 = vmul.f32 0.2, %v2233_v3  ;;  %v2235_v21 = vadd.f32 %v1358_v40, %v3207_v2  ;;  %v1360_v25 = vpop.f32.mrb[55].mxu0  ;;  %1694 = vmatprep.mubr.bf16.mxu1 %v1488_v59  ;;  %vm1403_vm4 = vcmp.gt.f32.partialorder %v2233_v3, 0.0 }
 0x240   :  { %v1436_v7 = vmul.f32 0.2, %v2234_v24  ;;  %v2236_v9 = vadd.f32 %v1360_v25, %v3211_v20  ;;  %1695 = vmatmul.mubr.bf16.gmra.mrb[48].mxu1 %v1487_v41  ;;  %vm1404_vm5 = vcmp.gt.f32.partialorder %v2234_v24, 0.0 }
 0x241   :  { %vm1405_vm6 = vcmp.gt.f32.partialorder %v2235_v21, 0.0  ;;  %v1437_v60 = vmul.f32 0.2, %v2235_v21  ;;  %v1467_v47 = vsel %vm1403_vm4, %v2233_v3, %v1435_v19 }
 0x242   :  { %vm1406_vm7 = vcmp.gt.f32.partialorder %v2236_v9, 0.0  ;;  %v1438_v50 = vmul.f32 0.2, %v2236_v9  ;;  %v1468_v56 = vsel %vm1404_vm5, %v2234_v24, %v1436_v7 }
 0x243   :  { %v1469_v32 = vsel %vm1405_vm6, %v2235_v21, %v1437_v60 }
 0x244   :  { %v1364_v38 = vpop.f32.mrb[56].mxu0  ;;  %v1470_v57 = vsel %vm1406_vm7, %v2236_v9, %v1438_v50  ;;  %v1489_v58 = vpack.c.bf16 %v1469_v32, %v1467_v47 }
 0x245   :  { %v2237_v63 = vadd.f32 %v1364_v38, %v3207_v2  ;;  %v1366_v17 = vpop.f32.mrb[57].mxu0  ;;  %v1490_v37 = vpack.c.bf16 %v1470_v57, %v1468_v56 }
 0x246   :  { %v2238_v55 = vadd.f32 %v1366_v17, %v3211_v20  ;;  %v1368_v61 = vpop.f32.mrb[58].mxu0 }
 0x247   :  { %v1439_v45 = vmul.f32 0.2, %v2237_v63  ;;  %v2239_v62 = vadd.f32 %v1368_v61, %v3207_v2  ;;  %v1370_v44 = vpop.f32.mrb[59].mxu0  ;;  %1702 = vmatprep.mubr.bf16.mxu1 %v1490_v37  ;;  %vm1407_vm8 = vcmp.gt.f32.partialorder %v2237_v63, 0.0 }
 0x248   :  { %v1440_v35 = vmul.f32 0.2, %v2238_v55  ;;  %v2240_v0 = vadd.f32 %v1370_v44, %v3211_v20  ;;  %1703 = vmatmul.mubr.bf16.gmra.mrb[52].mxu1 %v1489_v58  ;;  %vm1408_vm9 = vcmp.gt.f32.partialorder %v2238_v55, 0.0 }
 0x249   :  { %vm1409_vm10 = vcmp.gt.f32.partialorder %v2239_v62, 0.0  ;;  %v1441_v8 = vmul.f32 0.2, %v2239_v62  ;;  %v1471_v46 = vsel %vm1407_vm8, %v2237_v63, %v1439_v45 }
 0x24a   :  { %vm1410_vm11 = vcmp.gt.f32.partialorder %v2240_v0, 0.0  ;;  %v1442_v27 = vmul.f32 0.2, %v2240_v0  ;;  %v1472_v34 = vsel %vm1408_vm9, %v2238_v55, %v1440_v35 }
 0x24b   :  { %v1473_v51 = vsel %vm1409_vm10, %v2239_v62, %v1441_v8 }
 0x24c   :  { %v1374_v22 = vpop.f32.mrb[60].mxu0  ;;  %v1474_v48 = vsel %vm1410_vm11, %v2240_v0, %v1442_v27  ;;  %v1491_v49 = vpack.c.bf16 %v1473_v51, %v1471_v46 }
 0x24d   :  { %v2241_v1 = vadd.f32 %v1374_v22, %v3207_v2  ;;  %v1376_v26 = vpop.f32.mrb[61].mxu0  ;;  %v1492_v54 = vpack.c.bf16 %v1474_v48, %v1472_v34 }
 0x24e   :  { %v2242_v4 = vadd.f32 %v1376_v26, %v3211_v20  ;;  %v1378_v33 = vpop.f32.mrb[62].mxu0 }
 0x24f   :  { %v1443_v12 = vmul.f32 0.2, %v2241_v1  ;;  %v2243_v11 = vadd.f32 %v1378_v33, %v3207_v2  ;;  %v1380_v14 = vpop.f32.mrb[63].mxu0  ;;  %1710 = vmatprep.mubr.bf16.mxu1 %v1492_v54  ;;  %vm1411_vm12 = vcmp.gt.f32.partialorder %v2241_v1, 0.0  ;;  %v2449_v2 = vld [vmem:[%s3343_s7 + $0x18] sm:$0xff]  }
 0x250   :  { %v1444_v53 = vmul.f32 0.2, %v2242_v4  ;;  %v2244_v28 = vadd.f32 %v1380_v14, %v3211_v20  ;;  %1711 = vmatmul.mubr.bf16.gmra.mrb[56].mxu1 %v1491_v49  ;;  %vm1412_vm13 = vcmp.gt.f32.partialorder %v2242_v4, 0.0  ;;  %2187 = vmatprep.subr.bf16.mxu1 %v2449_v2  ;;  %v2450_v20 = vld [vmem:[%s3343_s7 + $0x20] sm:$0xff]  }
 0x251   :  { %vm1413_vm14 = vcmp.gt.f32.partialorder %v2243_v11, 0.0  ;;  %v1445_v6 = vmul.f32 0.2, %v2243_v11  ;;  %v1475_v30 = vsel %vm1411_vm12, %v2241_v1, %v1443_v12  ;;  %2188 = vmatpush3.bf16.msra.mxu1 %v2449_v2 }
 0x252   :  { %vm1414_vm15 = vcmp.gt.f32.partialorder %v2244_v28, 0.0  ;;  %v1446_v23 = vmul.f32 0.2, %v2244_v28  ;;  %v1476_v13 = vsel %vm1412_vm13, %v2242_v4, %v1444_v53  ;;  %2189 = vmatprep.subr.bf16.mxu1 %v2450_v20 }
 0x253   :  { %v1477_v5 = vsel %vm1413_vm14, %v2243_v11, %v1445_v6 }
 0x254   :  { %v1478_v29 = vsel %vm1414_vm15, %v2244_v28, %v1446_v23  ;;  %v1493_v15 = vpack.c.bf16 %v1477_v5, %v1475_v30 }
 0x255   :  { %v1494_v10 = vpack.c.bf16 %v1478_v29, %v1476_v13  ;;  %2190 = vmatpush3.bf16.msra.mxu1 %v2450_v20 }
 0x256   :  { %2191 = vmatprep.subr.bf16.mxu1 %v2451_v31 }
 0x257   :  { %1718 = vmatprep.mubr.bf16.mxu1 %v1494_v10 }
 0x258   :  { %1719 = vmatmul.mubr.bf16.gmra.mrb[60].mxu1 %v1493_v15 }
 0x259   :  { %2192 = vmatpush3.bf16.msra.mxu1 %v2451_v31 }
 0x25a   :  { %2193 = vmatprep.subr.bf16.mxu1 %v2452_v36 }
 0x25d   :  { %2194 = vmatpush3.bf16.msra.mxu1 %v2452_v36 }
 0x25e   :  { %2195 = vmatprep.subr.bf16.mxu1 %v2453_v39 }
 0x261   :  { %2196 = vmatpush3.bf16.msra.mxu1 %v2453_v39 }
 0x2f3   :  { %v2117_v43 = vpop.f32.mrb[32].mxu1 }
 0x2f4   :  { %v2118_v16 = vpop.f32.mrb[33].mxu1 }
 0x2f5   :  { %v2119_v42 = vadd.f32 %v2118_v16, %v2117_v43  ;;  %v2120_v41 = vpop.f32.mrb[34].mxu1 }
 0x2f6   :  { %v2121_v3 = vpop.f32.mrb[35].mxu1 }
 0x2f7   :  { %v1665_v52 = vadd.f32 %v2119_v42, %v3269_v18  ;;  %v2122_v59 = vadd.f32 %v2121_v3, %v2120_v41 }
 0x2f9   :  { %v1743_v24 = vmul.f32 0.2, %v1665_v52  ;;  %v1668_v40 = vadd.f32 %v2122_v59, %v3269_v18  ;;  %vm1727_vm0 = vcmp.gt.f32.partialorder %v1665_v52, 0.0 }
 0x2fb   :  { %vm1728_vm1 = vcmp.gt.f32.partialorder %v1668_v40, 0.0  ;;  %v1744_v19 = vmul.f32 0.2, %v1668_v40  ;;  %v2123_v21 = vpop.f32.mrb[36].mxu1  ;;  %v1759_v60 = vsel %vm1727_vm0, %v1665_v52, %v1743_v24 }
 0x2fc   :  { %v2124_v25 = vpop.f32.mrb[37].mxu1 }
 0x2fd   :  { %v2125_v7 = vadd.f32 %v2124_v25, %v2123_v21  ;;  %v2126_v9 = vpop.f32.mrb[38].mxu1  ;;  %v1760_v50 = vsel %vm1728_vm1, %v1668_v40, %v1744_v19 }
 0x2fe   :  { %v2127_v47 = vpop.f32.mrb[39].mxu1  ;;  %v1775_v32 = vpack.c.bf16 %v1760_v50, %v1759_v60 }
 0x2ff   :  { %v1673_v38 = vadd.f32 %v2125_v7, %v3269_v18  ;;  %v2128_v56 = vadd.f32 %v2127_v47, %v2126_v9 }
 0x300   :  { %2197 = vmatprep.mubr.bf16.mxu1 %v1775_v32 }
 0x301   :  { %v1745_v57 = vmul.f32 0.2, %v1673_v38  ;;  %v1676_v58 = vadd.f32 %v2128_v56, %v3269_v18  ;;  %vm1729_vm2 = vcmp.gt.f32.partialorder %v1673_v38, 0.0 }
 0x303   :  { %vm1730_vm3 = vcmp.gt.f32.partialorder %v1676_v58, 0.0  ;;  %v1746_v63 = vmul.f32 0.2, %v1676_v58  ;;  %v2129_v17 = vpop.f32.mrb[40].mxu1  ;;  %v1761_v55 = vsel %vm1729_vm2, %v1673_v38, %v1745_v57 }
 0x304   :  { %v2130_v37 = vpop.f32.mrb[41].mxu1 }
 0x305   :  { %v1762_v61 = vsel %vm1730_vm3, %v1676_v58, %v1746_v63  ;;  %v2131_v45 = vadd.f32 %v2130_v37, %v2129_v17  ;;  %v2132_v62 = vpop.f32.mrb[42].mxu1 }
 0x306   :  { %v1776_v44 = vpack.c.bf16 %v1762_v61, %v1761_v55  ;;  %v2133_v35 = vpop.f32.mrb[43].mxu1 }
 0x307   :  { %v1681_v0 = vadd.f32 %v2131_v45, %v3269_v18  ;;  %v2134_v8 = vadd.f32 %v2133_v35, %v2132_v62 }
 0x308   :  { %2198 = vmatmul.mubr.bf16.vlgmr.msra.gmra.mrb[64].mxu1 %v1776_v44 }
 0x309   :  { %v1747_v27 = vmul.f32 0.2, %v1681_v0  ;;  %v1684_v46 = vadd.f32 %v2134_v8, %v3269_v18  ;;  %vm1731_vm4 = vcmp.gt.f32.partialorder %v1681_v0, 0.0 }
 0x30b   :  { %vm1732_vm5 = vcmp.gt.f32.partialorder %v1684_v46, 0.0  ;;  %v1748_v51 = vmul.f32 0.2, %v1684_v46  ;;  %v2135_v22 = vpop.f32.mrb[44].mxu1  ;;  %v1763_v1 = vsel %vm1731_vm4, %v1681_v0, %v1747_v27 }
 0x30c   :  { %v2136_v34 = vpop.f32.mrb[45].mxu1 }
 0x30d   :  { %v2137_v48 = vadd.f32 %v2136_v34, %v2135_v22  ;;  %v2138_v49 = vpop.f32.mrb[46].mxu1  ;;  %v1764_v26 = vsel %vm1732_vm5, %v1684_v46, %v1748_v51 }
 0x30e   :  { %v2139_v54 = vpop.f32.mrb[47].mxu1  ;;  %v1777_v4 = vpack.c.bf16 %v1764_v26, %v1763_v1  ;;  %v2092_v26 = vld [vmem:[%s3346_s8] ss:$0 sm:$0xff] }
 0x30f   :  { %v1689_v33 = vadd.f32 %v2137_v48, %v3269_v18  ;;  %v2140_v12 = vadd.f32 %v2139_v54, %v2138_v49 }
 0x310   :  { %2201 = vmatprep.mubr.bf16.mxu1 %v1777_v4 }
 0x311   :  { %v1749_v11 = vmul.f32 0.2, %v1689_v33  ;;  %v1692_v14 = vadd.f32 %v2140_v12, %v3269_v18  ;;  %vm1733_vm6 = vcmp.gt.f32.partialorder %v1689_v33, 0.0 }
 0x313   :  { %vm1734_vm7 = vcmp.gt.f32.partialorder %v1692_v14, 0.0  ;;  %v1750_v53 = vmul.f32 0.2, %v1692_v14  ;;  %v2141_v28 = vpop.f32.mrb[48].mxu1  ;;  %v1765_v5 = vsel %vm1733_vm6, %v1689_v33, %v1749_v11 }
 0x314   :  { %v2142_v6 = vpop.f32.mrb[49].mxu1 }
 0x315   :  { %v2143_v23 = vadd.f32 %v2142_v6, %v2141_v28  ;;  %v2144_v30 = vpop.f32.mrb[50].mxu1  ;;  %v1766_v13 = vsel %vm1734_vm7, %v1692_v14, %v1750_v53 }
 0x316   :  { %v2145_v29 = vpop.f32.mrb[51].mxu1  ;;  %v1778_v15 = vpack.c.bf16 %v1766_v13, %v1765_v5 }
 0x317   :  { %v1697_v10 = vadd.f32 %v2143_v23, %v3269_v18  ;;  %v2146_v2 = vadd.f32 %v2145_v29, %v2144_v30 }
 0x318   :  { %2202 = vmatmul.mubr.bf16.gmra.mrb[68].mxu1 %v1778_v15 }
 0x319   :  { %v1751_v20 = vmul.f32 0.2, %v1697_v10  ;;  %v1700_v31 = vadd.f32 %v2146_v2, %v3269_v18  ;;  %vm1735_vm8 = vcmp.gt.f32.partialorder %v1697_v10, 0.0 }
 0x31b   :  { %vm1736_vm9 = vcmp.gt.f32.partialorder %v1700_v31, 0.0  ;;  %v1752_v36 = vmul.f32 0.2, %v1700_v31  ;;  %v2147_v39 = vpop.f32.mrb[52].mxu1  ;;  %v1767_v41 = vsel %vm1735_vm8, %v1697_v10, %v1751_v20 }
 0x31c   :  { %v2148_v43 = vpop.f32.mrb[53].mxu1 }
 0x31d   :  { %v2149_v16 = vadd.f32 %v2148_v43, %v2147_v39  ;;  %v2150_v42 = vpop.f32.mrb[54].mxu1  ;;  %v1768_v3 = vsel %vm1736_vm9, %v1700_v31, %v1752_v36 }
 0x31e   :  { %v2151_v52 = vpop.f32.mrb[55].mxu1  ;;  %v1779_v59 = vpack.c.bf16 %v1768_v3, %v1767_v41 }
 0x31f   :  { %v1705_v24 = vadd.f32 %v2149_v16, %v3269_v18  ;;  %v2152_v40 = vadd.f32 %v2151_v52, %v2150_v42 }
 0x320   :  { %2205 = vmatprep.mubr.bf16.mxu1 %v1779_v59 }
 0x321   :  { %v1753_v19 = vmul.f32 0.2, %v1705_v24  ;;  %v1708_v21 = vadd.f32 %v2152_v40, %v3269_v18  ;;  %vm1737_vm10 = vcmp.gt.f32.partialorder %v1705_v24, 0.0 }
 0x323   :  { %vm1738_vm11 = vcmp.gt.f32.partialorder %v1708_v21, 0.0  ;;  %v1754_v25 = vmul.f32 0.2, %v1708_v21  ;;  %v2153_v7 = vpop.f32.mrb[56].mxu1  ;;  %v1769_v47 = vsel %vm1737_vm10, %v1705_v24, %v1753_v19 }
 0x324   :  { %v2154_v9 = vpop.f32.mrb[57].mxu1 }
 0x325   :  { %v2155_v60 = vadd.f32 %v2154_v9, %v2153_v7  ;;  %v2156_v50 = vpop.f32.mrb[58].mxu1  ;;  %v1770_v32 = vsel %vm1738_vm11, %v1708_v21, %v1754_v25 }
 0x326   :  { %v2157_v38 = vpop.f32.mrb[59].mxu1  ;;  %v1780_v56 = vpack.c.bf16 %v1770_v32, %v1769_v47 }
 0x327   :  { %v1713_v57 = vadd.f32 %v2155_v60, %v3269_v18  ;;  %v2158_v58 = vadd.f32 %v2157_v38, %v2156_v50 }
 0x328   :  { %2206 = vmatmul.mubr.bf16.gmra.mrb[72].mxu1 %v1780_v56 }
 0x329   :  { %v1755_v63 = vmul.f32 0.2, %v1713_v57  ;;  %v1716_v17 = vadd.f32 %v2158_v58, %v3269_v18  ;;  %vm1739_vm12 = vcmp.gt.f32.partialorder %v1713_v57, 0.0 }
 0x32b   :  { %vm1740_vm13 = vcmp.gt.f32.partialorder %v1716_v17, 0.0  ;;  %v1756_v37 = vmul.f32 0.2, %v1716_v17  ;;  %v2159_v55 = vpop.f32.mrb[60].mxu1  ;;  %v1771_v44 = vsel %vm1739_vm12, %v1713_v57, %v1755_v63 }
 0x32c   :  { %v2160_v61 = vpop.f32.mrb[61].mxu1 }
 0x32d   :  { %v2161_v45 = vadd.f32 %v2160_v61, %v2159_v55  ;;  %v2162_v62 = vpop.f32.mrb[62].mxu1  ;;  %v1772_v35 = vsel %vm1740_vm13, %v1716_v17, %v1756_v37 }
 0x32e   :  { %v2163_v0 = vpop.f32.mrb[63].mxu1  ;;  %v1781_v8 = vpack.c.bf16 %v1772_v35, %v1771_v44 }
 0x32f   :  { %v1721_v27 = vadd.f32 %v2161_v45, %v3269_v18  ;;  %v2164_v46 = vadd.f32 %v2163_v0, %v2162_v62 }
 0x330   :  { %2209 = vmatprep.mubr.bf16.mxu1 %v1781_v8 }
 0x331   :  { %v1757_v51 = vmul.f32 0.2, %v1721_v27  ;;  %v1724_v22 = vadd.f32 %v2164_v46, %v3269_v18  ;;  %vm1741_vm14 = vcmp.gt.f32.partialorder %v1721_v27, 0.0 }
 0x333   :  { %vm1742_vm15 = vcmp.gt.f32.partialorder %v1724_v22, 0.0  ;;  %v1758_v34 = vmul.f32 0.2, %v1724_v22  ;;  %v1773_v48 = vsel %vm1741_vm14, %v1721_v27, %v1757_v51 }
 0x335   :  { %v1774_v49 = vsel %vm1742_vm15, %v1724_v22, %v1758_v34 }
 0x336   :  { %v1782_v1 = vpack.c.bf16 %v1774_v49, %v1773_v48 }
 0x338   :  { %2210 = vmatmul.mubr.bf16.gmra.mrb[76].mxu1 %v1782_v1 }
 0x3db   :  { %v2199_v54 = vpop.f32.mrb[64].mxu1 }
 0x3dc   :  { %v1897_v4 = vadd.f32 %v2199_v54, %v2092_v26  ;;  %v1888_v33 = vpop.f32.mrb[65].mxu1 }
 0x3dd   :  { %v1889_v12 = vadd.f32 %v2092_v26, %v1888_v33  ;;  %v2200_v11 = vpop.f32.mrb[66].mxu1 }
 0x3de   :  { %1953 = vst [vmem:[%s3347_s9 + $0x10] sm:$0xff] %v1897_v4  ;;  %v1900_v18 = vadd.f32 %v2200_v11, %v2092_v26  ;;  %v1891_v14 = vpop.f32.mrb[67].mxu1 }
 0x3df   :  { %1951 = vst [vmem:[%s3347_s9] sm:$0xff] %v1889_v12  ;;  %v1892_v53 = vadd.f32 %v2092_v26, %v1891_v14 }
 0x3e0   :  { %1954 = vst [vmem:[%s3347_s9 + $0x18] sm:$0xff] %v1900_v18 }
 0x3e1   :  { %1952 = vst [vmem:[%s3347_s9 + $0x8] sm:$0xff] %v1892_v53 }
 0x3eb   :  { %v2203_v28 = vpop.f32.mrb[68].mxu1 }
 0x3ec   :  { %v1913_v6 = vadd.f32 %v2203_v28, %v2092_v26  ;;  %v1904_v23 = vpop.f32.mrb[69].mxu1 }
 0x3ed   :  { %v1905_v30 = vadd.f32 %v2092_v26, %v1904_v23  ;;  %v2204_v5 = vpop.f32.mrb[70].mxu1 }
 0x3ee   :  { %1957 = vst [vmem:[%s3347_s9 + $0x30] sm:$0xff] %v1913_v6  ;;  %v1916_v13 = vadd.f32 %v2204_v5, %v2092_v26  ;;  %v1907_v29 = vpop.f32.mrb[71].mxu1 }
 0x3ef   :  { %1955 = vst [vmem:[%s3347_s9 + $0x20] sm:$0xff] %v1905_v30  ;;  %v1908_v15 = vadd.f32 %v2092_v26, %v1907_v29 }
 0x3f0   :  { %1958 = vst [vmem:[%s3347_s9 + $0x38] sm:$0xff] %v1916_v13 }
 0x3f1   :  { %1956 = vst [vmem:[%s3347_s9 + $0x28] sm:$0xff] %v1908_v15 }
 0x3fb   :  { %v2207_v10 = vpop.f32.mrb[72].mxu1 }
 0x3fc   :  { %v1929_v2 = vadd.f32 %v2207_v10, %v2092_v26  ;;  %v1920_v20 = vpop.f32.mrb[73].mxu1 }
 0x3fd   :  { %v1921_v31 = vadd.f32 %v2092_v26, %v1920_v20  ;;  %v2208_v36 = vpop.f32.mrb[74].mxu1 }
 0x3fe   :  { %1961 = vst [vmem:[%s3347_s9 + $0x50] sm:$0xff] %v1929_v2  ;;  %v1932_v39 = vadd.f32 %v2208_v36, %v2092_v26  ;;  %v1923_v43 = vpop.f32.mrb[75].mxu1 }
 0x3ff   :  { %1959 = vst [vmem:[%s3347_s9 + $0x40] sm:$0xff] %v1921_v31  ;;  %v1924_v16 = vadd.f32 %v2092_v26, %v1923_v43 }
 0x400   :  { %1962 = vst [vmem:[%s3347_s9 + $0x58] sm:$0xff] %v1932_v39 }
 0x401   :  { %1960 = vst [vmem:[%s3347_s9 + $0x48] sm:$0xff] %v1924_v16 }
 0x40b   :  { %v2211_v42 = vpop.f32.mrb[76].mxu1 }
 0x40c   :  { %v1945_v41 = vadd.f32 %v2211_v42, %v2092_v26  ;;  %v1936_v3 = vpop.f32.mrb[77].mxu1 }
 0x40d   :  { %v1937_v52 = vadd.f32 %v2092_v26, %v1936_v3  ;;  %v2212_v59 = vpop.f32.mrb[78].mxu1 }
 0x40e   :  { %1965 = vst [vmem:[%s3347_s9 + $0x70] sm:$0xff] %v1945_v41  ;;  %v1948_v24 = vadd.f32 %v2212_v59, %v2092_v26  ;;  %v1939_v40 = vpop.f32.mrb[79].mxu1 }
 0x40f   :  { %1963 = vst [vmem:[%s3347_s9 + $0x60] sm:$0xff] %v1937_v52  ;;  %v1940_v19 = vadd.f32 %v2092_v26, %v1939_v40 }
 0x410   :  { %1966 = vst [vmem:[%s3347_s9 + $0x78] sm:$0xff] %v1948_v24 }
 0x411   :  { %1964 = vst [vmem:[%s3347_s9 + $0x68] sm:$0xff] %v1940_v19 }

</bundles_post_ra>
